<compile_context>
chip_gen: v5e
topology: v5e:2x2
jax: 0.10.0
libtpu: 0.0.40
codegen_flags: <defaults>
</compile_context>

<pallas_src>
import jax
import jax.numpy as jnp
import numpy as np
from jax.experimental import pallas as pl
from jax.experimental.pallas import tpu as pltpu

_LANE = 128
_SUBLANE = 8
_MAX_BATCH_TILE = 512   # raised from 256 per perf review


def _round_up(x, m):
    return ((x + m - 1) // m) * m


def _cdiv(a, b):
    return (a + b - 1) // b


def _dqn_kernel(x_ref,
                w1_ref, b1_ref,
                w2_ref, b2_ref,
                w3_ref, b3_ref,
                w4_ref, b4_ref,
                w5_ref, b5_ref,
                w6_ref, b6_ref,
                o_ref):
    """One batch tile of the 6-layer MLP.

    Weights (bf16) and biases (f32) are fully resident in VMEM; the chain of
    matmul (f32 accumulation) + f32 bias/ReLU + bf16 cast runs back-to-back on
    the MXU/VPU with no intermediate HBM traffic.
    """

    def layer(h, w_ref, b_ref, *, relu, out_dtype):
        # bf16 x bf16 on the MXU, f32 accumulation.
        y = jnp.dot(h, w_ref[...], preferred_element_type=jnp.float32)
        y = y + b_ref[...]              # f32 bias, (1, out) broadcasts over rows
        if relu:
            y = jnp.maximum(y, 0.0)     # f32 on the VPU (v5e has no bf16 VALU)
        return y.astype(out_dtype)      # single cast; bf16 between layers

    h = x_ref[...].astype(jnp.bfloat16)          # cast input exactly once
    h = layer(h, w1_ref, b1_ref, relu=True, out_dtype=jnp.bfloat16)
    h = layer(h, w2_ref, b2_ref, relu=True, out_dtype=jnp.bfloat16)
    h = layer(h, w3_ref, b3_ref, relu=True, out_dtype=jnp.bfloat16)
    h = layer(h, w4_ref, b4_ref, relu=True, out_dtype=jnp.bfloat16)
    h = layer(h, w5_ref, b5_ref, relu=True, out_dtype=jnp.bfloat16)
    o_ref[...] = layer(h, w6_ref, b6_ref, relu=False, out_dtype=o_ref.dtype)


def _pick_batch_tile(batch):
    """Tiny batches (<=16): one grid step (latency path).  Otherwise pick the
    tile so there are always >= 2 grid steps (v7x megacore sharding) with a
    512-row cap, rounded to the sublane and sized to minimize pad waste."""
    padded = _round_up(batch, _SUBLANE)
    if batch <= 16:
        return padded
    n_steps = max(2, _cdiv(padded, _MAX_BATCH_TILE))
    return _round_up(_cdiv(padded, n_steps), _SUBLANE)


def dqn_forward(states, kernel_params, action_dim, *,
                batch_tile=None, out_dtype=jnp.float32):
    """states: (batch, state_dim) f32.
    kernel_params: list of (W bf16 (in, out), b f32 (1, out)); last layer is
    zero-padded to a lane-dense output width (see pack_params).
    out_dtype: jnp.float32 (default, matches module) or jnp.bfloat16 to halve
    output writeback on v5e when downstream tolerates bf16 Q-values."""
    batch, state_dim = states.shape
    tb = batch_tile or _pick_batch_tile(batch)
    padded_batch = _round_up(batch, tb)
    if padded_batch != batch:
        states = jnp.pad(states, ((0, padded_batch - batch), (0, 0)))
    padded_out = kernel_params[-1][0].shape[1]

    flat = [states]
    for w, b in kernel_params:
        flat.append(w)
        flat.append(b)

    # x / out get per-grid-step batch tiles; weights & biases use a constant
    # block index so they are DMA'd once and stay resident in VMEM across the
    # whole grid.
    in_specs = [pl.BlockSpec((tb, state_dim), lambda i: (i, 0))]
    for w, b in kernel_params:
        in_specs.append(pl.BlockSpec(w.shape, lambda i: (0, 0)))
        in_specs.append(pl.BlockSpec(b.shape, lambda i: (0, 0)))

    # Advisory cost estimate for XLA's scheduler around the custom call.
    flops = int(2 * padded_batch *
                sum(w.shape[0] * w.shape[1] for w, _ in kernel_params))
    bytes_accessed = int(
        states.size * states.dtype.itemsize
        + sum(w.size * w.dtype.itemsize + b.size * b.dtype.itemsize
              for w, b in kernel_params)
        + padded_batch * padded_out * np.dtype(out_dtype).itemsize)
    cost = pl.CostEstimate(flops=flops, transcendentals=0,
                           bytes_accessed=bytes_accessed)

    out = pl.pallas_call(
        _dqn_kernel,
        out_shape=jax.ShapeDtypeStruct((padded_batch, padded_out), out_dtype),
        grid=(padded_batch // tb,),
        in_specs=in_specs,
        out_specs=pl.BlockSpec((tb, padded_out), lambda i: (i, 0)),
        compiler_params=pltpu.CompilerParams(
            dimension_semantics=("parallel",)),
        cost_estimate=cost,
    )(*flat)
    return out[:batch, :action_dim]


def init_params(key, state_dim, action_dim):
    """Kaiming-uniform (relu gain) weights, zero biases — matches init_weights."""
    dims = [state_dim, 512, 512, 256, 256, 128, action_dim]
    params = []
    for i in range(len(dims) - 1):
        key, sub = jax.random.split(key)
        fan_in, fan_out = dims[i], dims[i + 1]
        bound = jnp.sqrt(6.0 / fan_in)  # gain(relu)=sqrt(2); bound=gain*sqrt(3/fan_in)
        # PyTorch weight is (out, in); we store the transpose (in, out).
        w = jax.random.uniform(sub, (fan_in, fan_out), jnp.float32,
                               minval=-bound, maxval=bound)
        b = jnp.zeros((1, fan_out), jnp.float32)
        params.append((w, b))
    return params


def pack_params(params_f32, pad_out_to=_LANE):
    """Convert f32 params to kernel layout: bf16 weights, f32 biases, and the
    final layer zero-padded to `pad_out_to` output lanes (lane-dense store)."""
    packed = []
    n = len(params_f32)
    for i, (w, b) in enumerate(params_f32):
        if i == n - 1 and w.shape[1] < pad_out_to:
            pad = pad_out_to - w.shape[1]
            w = jnp.pad(w, ((0, 0), (0, pad)))
            b = jnp.pad(b, ((0, 0), (0, pad)))
        packed.append((w.astype(jnp.bfloat16), b.astype(jnp.float32)))
    return packed


def reference_forward(states, kernel_params, action_dim):
    """Pure-JAX reference with numerics matching the kernel
    (bf16 weights + bf16 inter-layer activations, f32 accumulation)."""
    h = states.astype(jnp.bfloat16)
    n = len(kernel_params)
    y = None
    for i, (w, b) in enumerate(kernel_params):
        y = jnp.dot(h, w, preferred_element_type=jnp.float32) + b
        if i < n - 1:
            h = jnp.maximum(y, 0.0).astype(jnp.bfloat16)
    return y[:, :action_dim]


if __name__ == "__main__":
    STATE_DIM = 8
    ACTION_DIM = 4

    key = jax.random.PRNGKey(0)
    key, k_small, k_large = jax.random.split(key, 3)

    params_f32 = init_params(key, STATE_DIM, ACTION_DIM)
    kernel_params = pack_params(params_f32)

    # --- small batch (module's batch_size=16): single grid step, latency path
    states16 = jax.random.normal(k_small, (16, STATE_DIM), jnp.float32)
    q16 = jax.block_until_ready(dqn_forward(states16, kernel_params, ACTION_DIM))
    q16_ref = reference_forward(states16, kernel_params, ACTION_DIM)
    assert q16.shape == (16, ACTION_DIM)
    assert jnp.allclose(q16, q16_ref, atol=2e-2, rtol=2e-2), \
        float(jnp.max(jnp.abs(q16 - q16_ref)))

    # --- larger ragged batch (50): exercises >=2 grid steps + batch padding
    states50 = jax.random.normal(k_large, (50, STATE_DIM), jnp.float32)
    q50 = jax.block_until_ready(dqn_forward(states50, kernel_params, ACTION_DIM))
    q50_ref = reference_forward(states50, kernel_params, ACTION_DIM)
    assert q50.shape == (50, ACTION_DIM)
    assert jnp.allclose(q50, q50_ref, atol=2e-2, rtol=2e-2), \
        float(jnp.max(jnp.abs(q50 - q50_ref)))

    print("KERNEL_OK")
</pallas_src>

<mosaic_0001>
module attributes {stable_mosaic.version = 11 : i64} {
  func.func @_dqn_kernel(%arg0: i32, %arg1: memref<16x8xf32, #tpu.memory_space<vmem>>, %arg2: memref<8x512xbf16, #tpu.memory_space<vmem>>, %arg3: memref<1x512xf32, #tpu.memory_space<vmem>>, %arg4: memref<512x512xbf16, #tpu.memory_space<vmem>>, %arg5: memref<1x512xf32, #tpu.memory_space<vmem>>, %arg6: memref<512x256xbf16, #tpu.memory_space<vmem>>, %arg7: memref<1x256xf32, #tpu.memory_space<vmem>>, %arg8: memref<256x256xbf16, #tpu.memory_space<vmem>>, %arg9: memref<1x256xf32, #tpu.memory_space<vmem>>, %arg10: memref<256x128xbf16, #tpu.memory_space<vmem>>, %arg11: memref<1x128xf32, #tpu.memory_space<vmem>>, %arg12: memref<128x128xbf16, #tpu.memory_space<vmem>>, %arg13: memref<1x128xf32, #tpu.memory_space<vmem>>, %arg14: memref<16x128xf32, #tpu.memory_space<vmem>>) attributes {dimension_semantics = [#tpu.dimension_semantics<parallel>], iteration_bounds = array<i64: 1>, scalar_prefetch = 0 : i64, scratch_operands = 0 : i64, tpu.core_type = #tpu.core_type<tc>, window_params = [{transform_indices = @transform_0, window_bounds = array<i64: 16, 8>}, {pipeline_mode = #tpu.pipeline_mode<synchronous>, transform_indices = @transform_1, window_bounds = array<i64: 8, 512>}, {pipeline_mode = #tpu.pipeline_mode<synchronous>, transform_indices = @transform_2, window_bounds = array<i64: 1, 512>}, {pipeline_mode = #tpu.pipeline_mode<synchronous>, transform_indices = @transform_3, window_bounds = array<i64: 512, 512>}, {pipeline_mode = #tpu.pipeline_mode<synchronous>, transform_indices = @transform_4, window_bounds = array<i64: 1, 512>}, {pipeline_mode = #tpu.pipeline_mode<synchronous>, transform_indices = @transform_5, window_bounds = array<i64: 512, 256>}, {pipeline_mode = #tpu.pipeline_mode<synchronous>, transform_indices = @transform_6, window_bounds = array<i64: 1, 256>}, {pipeline_mode = #tpu.pipeline_mode<synchronous>, transform_indices = @transform_7, window_bounds = array<i64: 256, 256>}, {pipeline_mode = #tpu.pipeline_mode<synchronous>, transform_indices = @transform_8, window_bounds = array<i64: 1, 256>}, {pipeline_mode = #tpu.pipeline_mode<synchronous>, transform_indices = @transform_9, window_bounds = array<i64: 256, 128>}, {pipeline_mode = #tpu.pipeline_mode<synchronous>, transform_indices = @transform_10, window_bounds = array<i64: 1, 128>}, {pipeline_mode = #tpu.pipeline_mode<synchronous>, transform_indices = @transform_11, window_bounds = array<i64: 128, 128>}, {pipeline_mode = #tpu.pipeline_mode<synchronous>, transform_indices = @transform_12, window_bounds = array<i64: 1, 128>}, {transform_indices = @transform_13, window_bounds = array<i64: 16, 128>}]} {
    %c0 = arith.constant 0 : index
    %c0_0 = arith.constant 0 : index
    %0 = vector.load %arg1[%c0, %c0_0] : memref<16x8xf32, #tpu.memory_space<vmem>>, vector<16x8xf32>
    %1 = arith.truncf %0 : vector<16x8xf32> to vector<16x8xbf16>
    %c0_1 = arith.constant 0 : index
    %c0_2 = arith.constant 0 : index
    %2 = vector.load %arg2[%c0_1, %c0_2] : memref<8x512xbf16, #tpu.memory_space<vmem>>, vector<8x512xbf16>
    %cst = arith.constant dense<0.000000e+00> : vector<16x512xf32>
    %3 = tpu.matmul %1, %2, %cst {dimension_numbers = #tpu.dot_dimension_numbers<[1], [0], [0], [1], [0, 0, 1, 1], [], []>} : vector<16x8xbf16>, vector<8x512xbf16>, vector<16x512xf32> -> vector<16x512xf32>
    %c0_3 = arith.constant 0 : index
    %c0_4 = arith.constant 0 : index
    %4 = vector.load %arg3[%c0_3, %c0_4] : memref<1x512xf32, #tpu.memory_space<vmem>>, vector<1x512xf32>
    %5 = vector.broadcast %4 : vector<1x512xf32> to vector<16x512xf32>
    %6 = arith.addf %3, %5 : vector<16x512xf32>
    %cst_5 = arith.constant 0.000000e+00 : f32
    %7 = vector.broadcast %cst_5 : f32 to vector<16x512xf32>
    %8 = arith.maximumf %6, %7 : vector<16x512xf32>
    %9 = arith.truncf %8 : vector<16x512xf32> to vector<16x512xbf16>
    %c0_6 = arith.constant 0 : index
    %c0_7 = arith.constant 0 : index
    %10 = vector.load %arg4[%c0_6, %c0_7] : memref<512x512xbf16, #tpu.memory_space<vmem>>, vector<512x512xbf16>
    %cst_8 = arith.constant dense<0.000000e+00> : vector<16x512xf32>
    %11 = tpu.matmul %9, %10, %cst_8 {dimension_numbers = #tpu.dot_dimension_numbers<[1], [0], [0], [1], [0, 0, 1, 1], [], []>} : vector<16x512xbf16>, vector<512x512xbf16>, vector<16x512xf32> -> vector<16x512xf32>
    %c0_9 = arith.constant 0 : index
    %c0_10 = arith.constant 0 : index
    %12 = vector.load %arg5[%c0_9, %c0_10] : memref<1x512xf32, #tpu.memory_space<vmem>>, vector<1x512xf32>
    %13 = vector.broadcast %12 : vector<1x512xf32> to vector<16x512xf32>
    %14 = arith.addf %11, %13 : vector<16x512xf32>
    %cst_11 = arith.constant 0.000000e+00 : f32
    %15 = vector.broadcast %cst_11 : f32 to vector<16x512xf32>
    %16 = arith.maximumf %14, %15 : vector<16x512xf32>
    %17 = arith.truncf %16 : vector<16x512xf32> to vector<16x512xbf16>
    %c0_12 = arith.constant 0 : index
    %c0_13 = arith.constant 0 : index
    %18 = vector.load %arg6[%c0_12, %c0_13] : memref<512x256xbf16, #tpu.memory_space<vmem>>, vector<512x256xbf16>
    %cst_14 = arith.constant dense<0.000000e+00> : vector<16x256xf32>
    %19 = tpu.matmul %17, %18, %cst_14 {dimension_numbers = #tpu.dot_dimension_numbers<[1], [0], [0], [1], [0, 0, 1, 1], [], []>} : vector<16x512xbf16>, vector<512x256xbf16>, vector<16x256xf32> -> vector<16x256xf32>
    %c0_15 = arith.constant 0 : index
    %c0_16 = arith.constant 0 : index
    %20 = vector.load %arg7[%c0_15, %c0_16] : memref<1x256xf32, #tpu.memory_space<vmem>>, vector<1x256xf32>
    %21 = vector.broadcast %20 : vector<1x256xf32> to vector<16x256xf32>
    %22 = arith.addf %19, %21 : vector<16x256xf32>
    %cst_17 = arith.constant 0.000000e+00 : f32
    %23 = vector.broadcast %cst_17 : f32 to vector<16x256xf32>
    %24 = arith.maximumf %22, %23 : vector<16x256xf32>
    %25 = arith.truncf %24 : vector<16x256xf32> to vector<16x256xbf16>
    %c0_18 = arith.constant 0 : index
    %c0_19 = arith.constant 0 : index
    %26 = vector.load %arg8[%c0_18, %c0_19] : memref<256x256xbf16, #tpu.memory_space<vmem>>, vector<256x256xbf16>
    %cst_20 = arith.constant dense<0.000000e+00> : vector<16x256xf32>
    %27 = tpu.matmul %25, %26, %cst_20 {dimension_numbers = #tpu.dot_dimension_numbers<[1], [0], [0], [1], [0, 0, 1, 1], [], []>} : vector<16x256xbf16>, vector<256x256xbf16>, vector<16x256xf32> -> vector<16x256xf32>
    %c0_21 = arith.constant 0 : index
    %c0_22 = arith.constant 0 : index
    %28 = vector.load %arg9[%c0_21, %c0_22] : memref<1x256xf32, #tpu.memory_space<vmem>>, vector<1x256xf32>
    %29 = vector.broadcast %28 : vector<1x256xf32> to vector<16x256xf32>
    %30 = arith.addf %27, %29 : vector<16x256xf32>
    %cst_23 = arith.constant 0.000000e+00 : f32
    %31 = vector.broadcast %cst_23 : f32 to vector<16x256xf32>
    %32 = arith.maximumf %30, %31 : vector<16x256xf32>
    %33 = arith.truncf %32 : vector<16x256xf32> to vector<16x256xbf16>
    %c0_24 = arith.constant 0 : index
    %c0_25 = arith.constant 0 : index
    %34 = vector.load %arg10[%c0_24, %c0_25] : memref<256x128xbf16, #tpu.memory_space<vmem>>, vector<256x128xbf16>
    %cst_26 = arith.constant dense<0.000000e+00> : vector<16x128xf32>
    %35 = tpu.matmul %33, %34, %cst_26 {dimension_numbers = #tpu.dot_dimension_numbers<[1], [0], [0], [1], [0, 0, 1, 1], [], []>} : vector<16x256xbf16>, vector<256x128xbf16>, vector<16x128xf32> -> vector<16x128xf32>
    %c0_27 = arith.constant 0 : index
    %c0_28 = arith.constant 0 : index
    %36 = vector.load %arg11[%c0_27, %c0_28] : memref<1x128xf32, #tpu.memory_space<vmem>>, vector<1x128xf32>
    %37 = vector.broadcast %36 : vector<1x128xf32> to vector<16x128xf32>
    %38 = arith.addf %35, %37 : vector<16x128xf32>
    %cst_29 = arith.constant 0.000000e+00 : f32
    %39 = vector.broadcast %cst_29 : f32 to vector<16x128xf32>
    %40 = arith.maximumf %38, %39 : vector<16x128xf32>
    %41 = arith.truncf %40 : vector<16x128xf32> to vector<16x128xbf16>
    %c0_30 = arith.constant 0 : index
    %c0_31 = arith.constant 0 : index
    %42 = vector.load %arg12[%c0_30, %c0_31] : memref<128x128xbf16, #tpu.memory_space<vmem>>, vector<128x128xbf16>
    %cst_32 = arith.constant dense<0.000000e+00> : vector<16x128xf32>
    %43 = tpu.matmul %41, %42, %cst_32 {dimension_numbers = #tpu.dot_dimension_numbers<[1], [0], [0], [1], [0, 0, 1, 1], [], []>} : vector<16x128xbf16>, vector<128x128xbf16>, vector<16x128xf32> -> vector<16x128xf32>
    %c0_33 = arith.constant 0 : index
    %c0_34 = arith.constant 0 : index
    %44 = vector.load %arg13[%c0_33, %c0_34] : memref<1x128xf32, #tpu.memory_space<vmem>>, vector<1x128xf32>
    %45 = vector.broadcast %44 : vector<1x128xf32> to vector<16x128xf32>
    %46 = arith.addf %43, %45 : vector<16x128xf32>
    %c0_35 = arith.constant 0 : index
    %c0_36 = arith.constant 0 : index
    %47 = vector.load %arg14[%c0_35, %c0_36] : memref<16x128xf32, #tpu.memory_space<vmem>>, vector<16x128xf32>
    tpu.vector_store %arg14[%c0_35, %c0_36], %46 {strides = array<i32>} : memref<16x128xf32, #tpu.memory_space<vmem>>, vector<16x128xf32>,
    return
  }
  func.func @transform_0(%arg0: i32) -> (i32, i32) {
    %c0_i32 = arith.constant 0 : i32
    %c0_i32_0 = arith.constant 0 : i32
    return %arg0, %c0_i32 : i32, i32
  }
  func.func @transform_1(%arg0: i32) -> (i32, i32) {
    %c0_i32 = arith.constant 0 : i32
    %c0_i32_0 = arith.constant 0 : i32
    %c0_i32_1 = arith.constant 0 : i32
    return %c0_i32, %c0_i32_0 : i32, i32
  }
  func.func @transform_2(%arg0: i32) -> (i32, i32) {
    %c0_i32 = arith.constant 0 : i32
    %c0_i32_0 = arith.constant 0 : i32
    %c0_i32_1 = arith.constant 0 : i32
    return %c0_i32, %c0_i32_0 : i32, i32
  }
  func.func @transform_3(%arg0: i32) -> (i32, i32) {
    %c0_i32 = arith.constant 0 : i32
    %c0_i32_0 = arith.constant 0 : i32
    %c0_i32_1 = arith.constant 0 : i32
    return %c0_i32, %c0_i32_0 : i32, i32
  }
  func.func @transform_4(%arg0: i32) -> (i32, i32) {
    %c0_i32 = arith.constant 0 : i32
    %c0_i32_0 = arith.constant 0 : i32
    %c0_i32_1 = arith.constant 0 : i32
    return %c0_i32, %c0_i32_0 : i32, i32
  }
  func.func @transform_5(%arg0: i32) -> (i32, i32) {
    %c0_i32 = arith.constant 0 : i32
    %c0_i32_0 = arith.constant 0 : i32
    %c0_i32_1 = arith.constant 0 : i32
    return %c0_i32, %c0_i32_0 : i32, i32
  }
  func.func @transform_6(%arg0: i32) -> (i32, i32) {
    %c0_i32 = arith.constant 0 : i32
    %c0_i32_0 = arith.constant 0 : i32
    %c0_i32_1 = arith.constant 0 : i32
    return %c0_i32, %c0_i32_0 : i32, i32
  }
  func.func @transform_7(%arg0: i32) -> (i32, i32) {
    %c0_i32 = arith.constant 0 : i32
    %c0_i32_0 = arith.constant 0 : i32
    %c0_i32_1 = arith.constant 0 : i32
    return %c0_i32, %c0_i32_0 : i32, i32
  }
  func.func @transform_8(%arg0: i32) -> (i32, i32) {
    %c0_i32 = arith.constant 0 : i32
    %c0_i32_0 = arith.constant 0 : i32
    %c0_i32_1 = arith.constant 0 : i32
    return %c0_i32, %c0_i32_0 : i32, i32
  }
  func.func @transform_9(%arg0: i32) -> (i32, i32) {
    %c0_i32 = arith.constant 0 : i32
    %c0_i32_0 = arith.constant 0 : i32
    %c0_i32_1 = arith.constant 0 : i32
    return %c0_i32, %c0_i32_0 : i32, i32
  }
  func.func @transform_10(%arg0: i32) -> (i32, i32) {
    %c0_i32 = arith.constant 0 : i32
    %c0_i32_0 = arith.constant 0 : i32
    %c0_i32_1 = arith.constant 0 : i32
    return %c0_i32, %c0_i32_0 : i32, i32
  }
  func.func @transform_11(%arg0: i32) -> (i32, i32) {
    %c0_i32 = arith.constant 0 : i32
    %c0_i32_0 = arith.constant 0 : i32
    %c0_i32_1 = arith.constant 0 : i32
    return %c0_i32, %c0_i32_0 : i32, i32
  }
  func.func @transform_12(%arg0: i32) -> (i32, i32) {
    %c0_i32 = arith.constant 0 : i32
    %c0_i32_0 = arith.constant 0 : i32
    %c0_i32_1 = arith.constant 0 : i32
    return %c0_i32, %c0_i32_0 : i32, i32
  }
  func.func @transform_13(%arg0: i32) -> (i32, i32) {
    %c0_i32 = arith.constant 0 : i32
    %c0_i32_0 = arith.constant 0 : i32
    return %arg0, %c0_i32 : i32, i32
  }
}

</mosaic_0001>

<bundles_post_ra>
// kernel: tpu_custom_call.1
= control target key start
LH: loop header
LB: loop body
LE: loop exit
PB: predicated region body
PF: predicated region fallthrough
CT: control target
= control target key end

     0   :  { %18 = vsyncpa [#allocation3], 0  ;;  %s3892_s0 = inlined_call_operand.vmem [shape: f32[16,8], index: 0, kind: input, shape index: {}]   ;;  %s3893_s1 = inlined_call_operand.vmem [shape: bf16[8,512], index: 1, kind: input, shape index: {}]   ;;  %s3894_s2 = inlined_call_operand.vmem [shape: f32[1,512], index: 2, kind: input, shape index: {}]   ;;  %s3895_s3 = inlined_call_operand.hbm [shape: bf16[512,512], index: 3, kind: input, shape index: {}]   ;;  %s3896_s4 = inlined_call_operand.vmem [shape: f32[1,512], index: 4, kind: input, shape index: {}]   ;;  %s3897_s5 = inlined_call_operand.hbm [shape: bf16[512,256], index: 5, kind: input, shape index: {}]   ;;  %s3898_s6 = inlined_call_operand.vmem [shape: f32[1,256], index: 6, kind: input, shape index: {}]   ;;  %s3899_s7 = inlined_call_operand.hbm [shape: bf16[256,256], index: 7, kind: input, shape index: {}]   ;;  %s3900_s8 = inlined_call_operand.vmem [shape: f32[1,256], index: 8, kind: input, shape index: {}]   ;;  %s3901_s9 = inlined_call_operand.hbm [shape: bf16[256,128], index: 9, kind: input, shape index: {}]   ;;  %s3902_s10 = inlined_call_operand.vmem [shape: f32[1,128], index: 10, kind: input, shape index: {}]   ;;  %s3903_s11 = inlined_call_operand.hbm [shape: bf16[128,128], index: 11, kind: input, shape index: {}]   ;;  %s3904_s12 = inlined_call_operand.vmem [shape: f32[1,128], index: 12, kind: input, shape index: {}]   ;;  %s3905_s13 = inlined_call_operand.hbm [shape: f32[16,128], index: 13, kind: output, shape index: {}]  }
   0x1   :  { %19 = vsyncpa [#allocation6], 0 }
   0x2   :  { %20 = vsyncpa [#allocation9], 0  ;;  %s47_s27 = sshll.u32 %s3897_s5, 4  ;;  %s48_s27 = int_to_ptr.hbm [resolvable:$true] %s47_s27 }
   0x3   :  { %21 = vsyncpa [#allocation4], 0  ;;  %s3694_s28 = smov [#allocation5]   ;;  %s77_s15 = sshll.u32 %s3901_s9, 4  ;;  %s78_s15 = int_to_ptr.hbm [resolvable:$true] %s77_s15 }
   0x4   :  { %s49_s29 = sshll.u32 %s3694_s28, 4  ;;  %s3695_s16 = smov 128   ;;  %s50_s29 = int_to_ptr.vmem [resolvable:$true] %s49_s29 }
   0x5   :  { %s3696_s17 = smov 8   ;;  %s3697_s18 = smov [#allocation8]  }
   0x6   :  { %55 = dma.hbm_to_vmem [thread:$0]  %s48_s27, 8192, %s50_s29, [#allocation6], %s3695_s16, %s3695_s16, %s3696_s17  }
   0x7   :  { %s79_s19 = sshll.u32 %s3697_s18, 4  ;;  %s3698_s5 = smov 64   ;;  %s80_s19 = int_to_ptr.vmem [resolvable:$true] %s79_s19 }
   0x8   :  { %s3699_s20 = smov 4   ;;  %s32_s23 = sshll.u32 %s3895_s3, 4  ;;  %s33_s23 = int_to_ptr.hbm [resolvable:$true] %s32_s23 }
   0x9   :  { %85 = dma.hbm_to_vmem [thread:$0]  %s78_s15, 2048, %s80_s19, [#allocation9], %s3698_s5, %s3698_s5, %s3699_s20  }
   0xa   :  { %s3700_s24 = smov [#allocation2]   ;;  %s62_s28 = sshll.u32 %s3899_s7, 4  ;;  %s63_s28 = int_to_ptr.hbm [resolvable:$true] %s62_s28 }
   0xb   :  { %s34_s9 = sshll.u32 %s3700_s24, 4  ;;  %s3701_s27 = smov 256   ;;  %s35_s9 = int_to_ptr.vmem [resolvable:$true] %s34_s9 }
   0xc   :  { %s3702_s29 = smov 16   ;;  %s3703_s30 = smov [#allocation7]  }
   0xd   :  { %40 = dma.hbm_to_vmem [thread:$0]  %s33_s23, 16384, %s35_s9, [#allocation3], %s3701_s27, %s3701_s27, %s3702_s29  }
   0xe   :  { %s64_s14 = sshll.u32 %s3703_s30, 4  ;;  %s92_s19 = sshll.u32 %s3903_s11, 4  ;;  %s65_s14 = int_to_ptr.vmem [resolvable:$true] %s64_s14  ;;  %s93_s19 = int_to_ptr.hbm [resolvable:$true] %s92_s19 }
   0xf   :  { %70 = dma.hbm_to_vmem [thread:$0]  %s63_s28, 4096, %s65_s14, [#allocation6], %s3695_s16, %s3695_s16, %s3696_s17  }
  0x10   :  { %s3704_s3 = smov [#allocation10]  }
  0x11   :  { %s94_s21 = sshll.u32 %s3704_s3, 4  ;;  %s95_s21 = int_to_ptr.vmem [resolvable:$true] %s94_s21 }
  0x12   :  { %100 = dma.hbm_to_vmem [thread:$0]  %s93_s19, 1024, %s95_s21, [#allocation9], %s3698_s5, %s3698_s5, %s3699_s20  }
  0x13   :  { %3686 = dma.done.wait [#allocation3], 16384  }
  0x14   :  { %3687 = vsyncadd [#allocation3], 4294950912 }
  0x15   :  { %3688 = dma.done.wait [#allocation6], 12288  }
  0x16   :  { %3689 = vsyncadd [#allocation6], 4294955008 }
  0x17   :  { %3690 = dma.done.wait [#allocation9], 3072  }
  0x18   :  { %3691 = vsyncadd [#allocation9], 4294964224  ;;  %v127_v0 = vld [vmem:[%s3893_s1] sm:$0xff]  ;;  %v128_v1 = vld [vmem:[%s3893_s1 + $0x8] sm:$0xff]  ;;  %vm153_vm0 = vcmask 1043456   ;;  %vm149_vm1 = vcmask 64512  }
  0x19   :  { %v124_v2 = vld [vmem:[%s3892_s0] sm:$0xff]  ;;  %v141_v3 = vunpack.c.l.b16 %v127_v0  ;;  %v142_v4 = vunpack.c.h.b16 %v127_v0  ;;  %v143_v5 = vunpack.c.l.b16 %v128_v1  ;;  %v125_v6 = vld [vmem:[%s3892_s0 + $0x8] sm:$0xff]  ;;  %v144_v7 = vunpack.c.h.b16 %v128_v1  ;;  %v3342_v9 = vld [vmem:[#allocation2 + $0x1ec] sm:$0xf0]  ;;  %s3705_s14 = smov [#allocation11]   ;;  %s2269_s19 = sshll.u32 %s3905_s13, 4  ;;  %s2270_s19 = int_to_ptr.hbm [resolvable:$true] %s2269_s19 }
  0x1a   :  { %v2530_v8 = vld [vmem:[#allocation2 + $0x1e0] sm:$0xf]  ;;  %v3338_v16 = vld [vmem:[#allocation2 + $0x1cc] sm:$0xf0]  ;;  %v3809_v18 = vpack.c.bf16 %v125_v6, %v124_v2  ;;  %s2267_s18 = sshll.u32 %s3705_s14, 4  ;;  %s2268_s18 = int_to_ptr.vmem [resolvable:$true] %s2267_s18 }
  0x1b   :  { %v2402_v10 = vld [vmem:[#allocation2 + $0xe0] sm:$0xf]  ;;  %v145_v11 = vpack.c.b16 %v141_v3, %v141_v3  ;;  %v146_v12 = vpack.c.b16 %v142_v4, %v142_v4  ;;  %v147_v13 = vpack.c.b16 %v143_v5, %v143_v5  ;;  %v148_v14 = vpack.c.b16 %v144_v7, %v144_v7  ;;  %v3310_v17 = vld [vmem:[#allocation2 + $0xec] sm:$0xf0] }
  0x1c   :  { %v2514_v15 = vld [vmem:[#allocation2 + $0x1c0] sm:$0xf]  ;;  %v2531_v19 = vor.u32 %v3342_v9, %v2530_v8  ;;  %v2403_v20 = vor.u32 %v3310_v17, %v2402_v10  ;;  %v3374_v22 = vld [vmem:[#allocation2 + $0x2ec] sm:$0xf0] }
  0x1d   :  { %v2658_v21 = vld [vmem:[#allocation2 + $0x2e0] sm:$0xf]  ;;  %v155_v24 = vsel %vm153_vm0, %v145_v11, 0  ;;  %v158_v25 = vsel %vm153_vm0, %v146_v12, 0  ;;  %v161_v26 = vsel %vm153_vm0, %v147_v13, 0  ;;  %v164_v27 = vsel %vm153_vm0, %v148_v14, 0 }
  0x1e   :  { %v2386_v23 = vld [vmem:[#allocation2 + $0xc0] sm:$0xf]  ;;  %v3306_v28 = vld [vmem:[#allocation2 + $0xcc] sm:$0xf0]  ;;  %173 = vmatpush.bf16.msra.mxu3 %v155_v24  ;;  %187 = vmatpush.bf16.msra.mxu1 %v158_v25  ;;  %v2659_v29 = vor.u32 %v3374_v22, %v2658_v21  ;;  %v2515_v30 = vor.u32 %v3338_v16, %v2514_v15 }
  0x1f   :  { %201 = vmatpush.bf16.msra.mxu2 %v161_v26  ;;  %1012 = vmatpush.bf16.msra.mxu0 %v2403_v20  ;;  %v2498_v31 = vld [vmem:[#allocation2 + $0x1a0] sm:$0xf]  ;;  %v2387_v32 = vor.u32 %v3306_v28, %v2386_v23  ;;  %v3370_v34 = vld [vmem:[#allocation2 + $0x2cc] sm:$0xf0] }
  0x20   :  { %v2642_v33 = vld [vmem:[#allocation2 + $0x2c0] sm:$0xf]  ;;  %v3334_v35 = vld [vmem:[#allocation2 + $0x1ac] sm:$0xf0] }
  0x21   :  { %2284 = vmatmul.msk.bf16.vlgmr.msra.gmra.mxu3 %vm149_vm1, %v3809_v18  ;;  %2285 = vmatmul.msk.bf16.vlgmr.msra.gmra.mxu1 %vm149_vm1, %v3809_v18  ;;  %v2370_v36 = vld [vmem:[#allocation2 + $0xa0] sm:$0xf]  ;;  %v3302_v37 = vld [vmem:[#allocation2 + $0xac] sm:$0xf0]  ;;  %v2643_v38 = vor.u32 %v3370_v34, %v2642_v33  ;;  %v2499_v41 = vor.u32 %v3334_v35, %v2498_v31  ;;  %v2532_v34 = vld [vmem:[#allocation2 + $0x1f0] sm:$0xf0] }
  0x22   :  { %215 = vmatpush.bf16.msrb.mxu3 %v164_v27  ;;  %1026 = vmatpush.bf16.msrb.mxu1 %v2531_v19  ;;  %v2482_v39 = vld [vmem:[#allocation2 + $0x180] sm:$0xf]  ;;  %v3330_v40 = vld [vmem:[#allocation2 + $0x18c] sm:$0xf0]  ;;  %v2371_v42 = vor.u32 %v3302_v37, %v2370_v36  ;;  %v3308_v35 = vld [vmem:[#allocation2 + $0xe4] sm:$0xf] }
  0x23   :  { %2286 = vmatmul.msk.bf16.vlgmr.msra.gmra.mxu2 %vm149_vm1, %v3809_v18  ;;  %1013 = vmatpush.bf16.msra.mxu0 %v2387_v32  ;;  %v2626_v43 = vld [vmem:[#allocation2 + $0x2a0] sm:$0xf]  ;;  %v3366_v44 = vld [vmem:[#allocation2 + $0x2ac] sm:$0xf0]  ;;  %v2483_v53 = vor.u32 %v3330_v40, %v2482_v39  ;;  %v3340_v32 = vld [vmem:[#allocation2 + $0x1e4] sm:$0xf] }
  0x24   :  { %1040 = vmatpush.bf16.msrb.mxu2 %v2659_v29  ;;  %v2786_v45 = vld [vmem:[#allocation2 + $0x3e0] sm:$0xf]  ;;  %v3298_v47 = vld [vmem:[#allocation2 + $0x8c] sm:$0xf0]  ;;  %v2627_v50 = vor.u32 %v3366_v44, %v2626_v43  ;;  %v2404_v36 = vld [vmem:[#allocation2 + $0xf0] sm:$0xf0] }
  0x25   :  { %v2354_v46 = vld [vmem:[#allocation2 + $0x80] sm:$0xf]  ;;  %v3406_v48 = vld [vmem:[#allocation2 + $0x3ec] sm:$0xf0] }
  0x26   :  { %1027 = vmatpush.bf16.msrb.mxu1 %v2515_v30  ;;  %v2787_v49 = vor.u32 %v3406_v48, %v2786_v45  ;;  %v2770_v51 = vld [vmem:[#allocation2 + $0x3c0] sm:$0xf]  ;;  %v3402_v52 = vld [vmem:[#allocation2 + $0x3cc] sm:$0xf0]  ;;  %v2355_v55 = vor.u32 %v3298_v47, %v2354_v46  ;;  %v2535_v45 = vor.u32 %v3340_v32, %v2532_v34  ;;  %v3336_v46 = vld [vmem:[#allocation2 + $0x1c4] sm:$0xf]  ;;  %v2407_v47 = vor.u32 %v3308_v35, %v2404_v36 }
  0x27   :  { %1014 = vmatpush.bf16.msra.mxu0 %v2371_v42  ;;  %v2466_v54 = vld [vmem:[#allocation2 + $0x160] sm:$0xf]  ;;  %v3362_v57 = vld [vmem:[#allocation2 + $0x28c] sm:$0xf0]  ;;  %v2771_v61 = vor.u32 %v3402_v52, %v2770_v51  ;;  %v3372_v48 = vld [vmem:[#allocation2 + $0x2e4] sm:$0xf] }
  0x28   :  { %1041 = vmatpush.bf16.msrb.mxu2 %v2643_v38  ;;  %v2610_v56 = vld [vmem:[#allocation2 + $0x280] sm:$0xf]  ;;  %v3326_v58 = vld [vmem:[#allocation2 + $0x16c] sm:$0xf0]  ;;  %1054 = vmatpush.bf16.msra.mxu3 %v2787_v49  ;;  %v2660_v49 = vld [vmem:[#allocation2 + $0x2f0] sm:$0xf0] }
  0x29   :  { %v2338_v59 = vld [vmem:[#allocation2 + $0x60] sm:$0xf]  ;;  %v3294_v60 = vld [vmem:[#allocation2 + $0x6c] sm:$0xf0]  ;;  %v2611_v62 = vor.u32 %v3362_v57, %v2610_v56  ;;  %v2467_v1 = vor.u32 %v3326_v58, %v2466_v54  ;;  %v3304_v51 = vld [vmem:[#allocation2 + $0xc4] sm:$0xf] }
  0x2a   :  { %1028 = vmatpush.bf16.msrb.mxu1 %v2499_v41  ;;  %v2754_v63 = vld [vmem:[#allocation2 + $0x3a0] sm:$0xf]  ;;  %v3398_v0 = vld [vmem:[#allocation2 + $0x3ac] sm:$0xf0]  ;;  %v2339_v3 = vor.u32 %v3294_v60, %v2338_v59  ;;  %v2388_v52 = vld [vmem:[#allocation2 + $0xd0] sm:$0xf0] }
  0x2b   :  { %1015 = vmatpush.bf16.msra.mxu0 %v2355_v55  ;;  %v2450_v2 = vld [vmem:[#allocation2 + $0x140] sm:$0xf]  ;;  %v3358_v5 = vld [vmem:[#allocation2 + $0x26c] sm:$0xf0]  ;;  %v2755_v9 = vor.u32 %v3398_v0, %v2754_v63  ;;  %v2663_v55 = vor.u32 %v3372_v48, %v2660_v49  ;;  %v2391_v57 = vor.u32 %v3304_v51, %v2388_v52  ;;  %v3368_v58 = vld [vmem:[#allocation2 + $0x2c4] sm:$0xf] }
  0x2c   :  { %1042 = vmatpush.bf16.msrb.mxu2 %v2627_v50  ;;  %v2594_v4 = vld [vmem:[#allocation2 + $0x260] sm:$0xf]  ;;  %v3322_v6 = vld [vmem:[#allocation2 + $0x14c] sm:$0xf0]  ;;  %1055 = vmatpush.bf16.msra.mxu3 %v2771_v61  ;;  %v2516_v50 = vld [vmem:[#allocation2 + $0x1d0] sm:$0xf0] }
  0x2d   :  { %v2322_v7 = vld [vmem:[#allocation2 + $0x40] sm:$0xf]  ;;  %v3290_v8 = vld [vmem:[#allocation2 + $0x4c] sm:$0xf0]  ;;  %v2595_v10 = vor.u32 %v3358_v5, %v2594_v4  ;;  %v2451_v13 = vor.u32 %v3322_v6, %v2450_v2  ;;  %v2519_v56 = vor.u32 %v3336_v46, %v2516_v50  ;;  %v2644_v59 = vld [vmem:[#allocation2 + $0x2d0] sm:$0xf0] }
  0x2e   :  { %1029 = vmatpush.bf16.msrb.mxu1 %v2483_v53  ;;  %v2738_v11 = vld [vmem:[#allocation2 + $0x380] sm:$0xf]  ;;  %v3394_v12 = vld [vmem:[#allocation2 + $0x38c] sm:$0xf0]  ;;  %v2323_v15 = vor.u32 %v3290_v8, %v2322_v7  ;;  %v3332_v60 = vld [vmem:[#allocation2 + $0x1a4] sm:$0xf] }
  0x2f   :  { %1016 = vmatpush.bf16.msra.mxu0 %v2339_v3  ;;  %v2434_v14 = vld [vmem:[#allocation2 + $0x120] sm:$0xf]  ;;  %v3354_v17 = vld [vmem:[#allocation2 + $0x24c] sm:$0xf0]  ;;  %v2739_v22 = vor.u32 %v3394_v12, %v2738_v11  ;;  %v2500_v61 = vld [vmem:[#allocation2 + $0x1b0] sm:$0xf0] }
  0x30   :  { %1043 = vmatpush.bf16.msrb.mxu2 %v2611_v62  ;;  %v2578_v16 = vld [vmem:[#allocation2 + $0x240] sm:$0xf]  ;;  %v3318_v19 = vld [vmem:[#allocation2 + $0x12c] sm:$0xf0]  ;;  %1056 = vmatpush.bf16.msra.mxu3 %v2755_v9  ;;  %v2647_v62 = vor.u32 %v3368_v58, %v2644_v59  ;;  %v2503_v63 = vor.u32 %v3332_v60, %v2500_v61  ;;  %v3328_v0 = vld [vmem:[#allocation2 + $0x184] sm:$0xf] }
  0x31   :  { %2287 = vmatmul.msk.bf16.vlgmr.msrb.gmra.mxu3 %vm149_vm1, %v3809_v18  ;;  %v2306_v20 = vld [vmem:[#allocation2 + $0x20] sm:$0xf]  ;;  %v3286_v21 = vld [vmem:[#allocation2 + $0x2c] sm:$0xf0]  ;;  %v2579_v23 = vor.u32 %v3354_v17, %v2578_v16  ;;  %v2435_v28 = vor.u32 %v3318_v19, %v2434_v14  ;;  %v3300_v3 = vld [vmem:[#allocation2 + $0xa4] sm:$0xf] }
  0x32   :  { %1030 = vmatpush.bf16.msrb.mxu1 %v2467_v1  ;;  %v2418_v24 = vld [vmem:[#allocation2 + $0x100] sm:$0xf]  ;;  %v3314_v25 = vld [vmem:[#allocation2 + $0x10c] sm:$0xf0]  ;;  %v2307_v29 = vor.u32 %v3286_v21, %v2306_v20  ;;  %v2484_v1 = vld [vmem:[#allocation2 + $0x190] sm:$0xf0] }
  0x33   :  { %v2722_v26 = vld [vmem:[#allocation2 + $0x360] sm:$0xf]  ;;  %v3390_v27 = vld [vmem:[#allocation2 + $0x36c] sm:$0xf0]  ;;  %1017 = vmatpush.bf16.msra.mxu0 %v2323_v15  ;;  %v2419_v41 = vor.u32 %v3314_v25, %v2418_v24  ;;  %v2487_v2 = vor.u32 %v3328_v0, %v2484_v1  ;;  %v2372_v4 = vld [vmem:[#allocation2 + $0xb0] sm:$0xf0] }
  0x34   :  { %1044 = vmatpush.bf16.msrb.mxu2 %v2595_v10  ;;  %v2562_v30 = vld [vmem:[#allocation2 + $0x220] sm:$0xf]  ;;  %v3350_v31 = vld [vmem:[#allocation2 + $0x22c] sm:$0xf0]  ;;  %1057 = vmatpush.bf16.msra.mxu3 %v2739_v22  ;;  %v2723_v37 = vor.u32 %v3390_v27, %v2722_v26  ;;  %v3364_v5 = vld [vmem:[#allocation2 + $0x2a4] sm:$0xf]  ;;  %v2375_v6 = vor.u32 %v3300_v3, %v2372_v4 }
  0x35   :  { %v2290_v33 = vld [vmem:[#allocation2] sm:$0xf]  ;;  %v3282_v18 = vld [vmem:[#allocation2 + $0xc] sm:$0xf0]  ;;  %v2563_v38 = vor.u32 %v3350_v31, %v2562_v30  ;;  %v2628_v7 = vld [vmem:[#allocation2 + $0x2b0] sm:$0xf0] }
  0x36   :  { %1031 = vmatpush.bf16.msrb.mxu1 %v2451_v13  ;;  %v2706_v39 = vld [vmem:[#allocation2 + $0x340] sm:$0xf]  ;;  %v3386_v40 = vld [vmem:[#allocation2 + $0x34c] sm:$0xf0]  ;;  %v2291_v42 = vor.u32 %v3282_v18, %v2290_v33  ;;  %v2631_v8 = vor.u32 %v3364_v5, %v2628_v7  ;;  %v3324_v9 = vld [vmem:[#allocation2 + $0x164] sm:$0xf] }
  0x37   :  { %1018 = vmatpush.bf16.msra.mxu0 %v2307_v29  ;;  %v2546_v43 = vld [vmem:[#allocation2 + $0x200] sm:$0xf]  ;;  %v3346_v44 = vld [vmem:[#allocation2 + $0x20c] sm:$0xf0]  ;;  %v2707_v53 = vor.u32 %v3386_v40, %v2706_v39  ;;  %v2468_v10 = vld [vmem:[#allocation2 + $0x170] sm:$0xf0] }
  0x38   :  { %1045 = vmatpush.bf16.msrb.mxu2 %v2579_v23  ;;  %1058 = vmatpush.bf16.msra.mxu3 %v2723_v37  ;;  %v2547_v54 = vor.u32 %v3346_v44, %v2546_v43  ;;  %v2471_v11 = vor.u32 %v3324_v9, %v2468_v10  ;;  %v2690_v12 = vld [vmem:[#allocation2 + $0x320] sm:$0xf]  ;;  %v3382_v13 = vld [vmem:[#allocation2 + $0x32c] sm:$0xf0]  ;;  %v3296_v15 = vld [vmem:[#allocation2 + $0x84] sm:$0xf] }
  0x39   :  { %v2691_v14 = vor.u32 %v3382_v13, %v2690_v12  ;;  %v2356_v16 = vld [vmem:[#allocation2 + $0x90] sm:$0xf0]  ;;  %v3360_v17 = vld [vmem:[#allocation2 + $0x284] sm:$0xf]  ;;  %v2674_v25 = vld [vmem:[#allocation2 + $0x300] sm:$0xf] }
  0x3a   :  { %1032 = vmatpush.bf16.msrb.mxu1 %v2435_v28  ;;  %v2359_v19 = vor.u32 %v3296_v15, %v2356_v16  ;;  %v2612_v20 = vld [vmem:[#allocation2 + $0x290] sm:$0xf0]  ;;  %v3320_v22 = vld [vmem:[#allocation2 + $0x144] sm:$0xf]  ;;  %v3378_v26 = vld [vmem:[#allocation2 + $0x30c] sm:$0xf0] }
  0x3b   :  { %1019 = vmatpush.bf16.msra.mxu0 %v2291_v42  ;;  %v2615_v21 = vor.u32 %v3360_v17, %v2612_v20  ;;  %v2452_v23 = vld [vmem:[#allocation2 + $0x150] sm:$0xf0]  ;;  %v2675_v27 = vor.u32 %v3378_v26, %v2674_v25  ;;  %v3292_v28 = vld [vmem:[#allocation2 + $0x64] sm:$0xf]  ;;  %v3826_v13 = vld [vmem:[%s3894_s2] sm:$0xf] }
  0x3c   :  { %1046 = vmatpush.bf16.msrb.mxu2 %v2563_v38  ;;  %1059 = vmatpush.bf16.msra.mxu3 %v2707_v53  ;;  %v2455_v24 = vor.u32 %v3320_v22, %v2452_v23  ;;  %v2340_v29 = vld [vmem:[#allocation2 + $0x70] sm:$0xf0]  ;;  %v3356_v30 = vld [vmem:[#allocation2 + $0x264] sm:$0xf]  ;;  %v132_v16 = vperm.slane %v3826_v13, 1 }
  0x3d   :  { %v2343_v31 = vor.u32 %v3292_v28, %v2340_v29  ;;  %v2596_v32 = vld [vmem:[#allocation2 + $0x270] sm:$0xf0]  ;;  %v3404_v33 = vld [vmem:[#allocation2 + $0x3e4] sm:$0xf]  ;;  %v2538_v29 = vld [vmem:[#allocation2 + $0x1e8] sm:$0xf] }
  0x3e   :  { %1033 = vmatpush.bf16.msrb.mxu1 %v2419_v41  ;;  %v2788_v18 = vld [vmem:[#allocation2 + $0x3f0] sm:$0xf0]  ;;  %v2599_v34 = vor.u32 %v3356_v30, %v2596_v32  ;;  %v3316_v36 = vld [vmem:[#allocation2 + $0x124] sm:$0xf]  ;;  %v3343_v30 = vld [vmem:[#allocation2 + $0x1f4] sm:$0xf0] }
  0x3f   :  { %1068 = vmatpush.bf16.msrb.mxu0 %v2407_v47  ;;  %v2791_v35 = vor.u32 %v3404_v33, %v2788_v18  ;;  %v2436_v37 = vld [vmem:[#allocation2 + $0x130] sm:$0xf0]  ;;  %v3288_v39 = vld [vmem:[#allocation2 + $0x44] sm:$0xf]  ;;  %v2539_v33 = vor.u32 %v3343_v30, %v2538_v29  ;;  %v3359_v29 = vld [vmem:[#allocation2 + $0x274] sm:$0xf0] }
  0x40   :  { %1047 = vmatpush.bf16.msrb.mxu2 %v2547_v54  ;;  %1060 = vmatpush.bf16.msra.mxu3 %v2691_v14  ;;  %v2439_v38 = vor.u32 %v3316_v36, %v2436_v37  ;;  %v2324_v40 = vld [vmem:[#allocation2 + $0x50] sm:$0xf0]  ;;  %v3352_v41 = vld [vmem:[#allocation2 + $0x244] sm:$0xf]  ;;  %v3339_v36 = vld [vmem:[#allocation2 + $0x1d4] sm:$0xf0] }
  0x41   :  { %v2327_v42 = vor.u32 %v3288_v39, %v2324_v40  ;;  %v2580_v43 = vld [vmem:[#allocation2 + $0x250] sm:$0xf0]  ;;  %v3400_v44 = vld [vmem:[#allocation2 + $0x3c4] sm:$0xf]  ;;  %v2410_v40 = vld [vmem:[#allocation2 + $0xe8] sm:$0xf] }
  0x42   :  { %1082 = vmatpush.bf16.msra.mxu1 %v2535_v45  ;;  %v2772_v45 = vld [vmem:[#allocation2 + $0x3d0] sm:$0xf0]  ;;  %v2583_v46 = vor.u32 %v3352_v41, %v2580_v43  ;;  %v3312_v48 = vld [vmem:[#allocation2 + $0x104] sm:$0xf]  ;;  %v3311_v41 = vld [vmem:[#allocation2 + $0xf4] sm:$0xf0] }
  0x43   :  { %1069 = vmatpush.bf16.msrb.mxu0 %v2391_v57  ;;  %v2775_v47 = vor.u32 %v3400_v44, %v2772_v45  ;;  %v2420_v49 = vld [vmem:[#allocation2 + $0x110] sm:$0xf0]  ;;  %v3284_v51 = vld [vmem:[#allocation2 + $0x24] sm:$0xf]  ;;  %v2666_v45 = vld [vmem:[#allocation2 + $0x2e8] sm:$0xf] }
  0x44   :  { %1096 = vmatpush.bf16.msra.mxu2 %v2663_v55  ;;  %1061 = vmatpush.bf16.msra.mxu3 %v2675_v27  ;;  %v2423_v50 = vor.u32 %v3312_v48, %v2420_v49  ;;  %v2308_v52 = vld [vmem:[#allocation2 + $0x30] sm:$0xf0]  ;;  %v3348_v53 = vld [vmem:[#allocation2 + $0x224] sm:$0xf]  ;;  %v131_v27 = vperm.slane %v3826_v13, 0 }
  0x45   :  { %v2311_v54 = vor.u32 %v3284_v51, %v2308_v52  ;;  %v2564_v55 = vld [vmem:[#allocation2 + $0x230] sm:$0xf0]  ;;  %v3280_v60 = vld [vmem:[#allocation2 + $0x4] sm:$0xf]  ;;  %v2506_v49 = vld [vmem:[#allocation2 + $0x1a8] sm:$0xf]  ;;  %v2411_v52 = vor.u32 %v3311_v41, %v2410_v40 }
  0x46   :  { %1083 = vmatpush.bf16.msra.mxu1 %v2519_v56  ;;  %v3396_v56 = vld [vmem:[#allocation2 + $0x3a4] sm:$0xf]  ;;  %v2756_v57 = vld [vmem:[#allocation2 + $0x3b0] sm:$0xf0]  ;;  %v2567_v58 = vor.u32 %v3348_v53, %v2564_v55  ;;  %v2394_v55 = vld [vmem:[#allocation2 + $0xc8] sm:$0xf] }
  0x47   :  { %1070 = vmatpush.bf16.msrb.mxu0 %v2375_v6  ;;  %v2759_v59 = vor.u32 %v3396_v56, %v2756_v57  ;;  %v2292_v61 = vld [vmem:[#allocation2 + $0x10] sm:$0xf0]  ;;  %v3392_v1 = vld [vmem:[#allocation2 + $0x384] sm:$0xf]  ;;  %v3307_v56 = vld [vmem:[#allocation2 + $0xd4] sm:$0xf0] }
  0x48   :  { %1097 = vmatpush.bf16.msra.mxu2 %v2647_v62  ;;  %1110 = vmatpush.bf16.msrb.mxu3 %v2791_v35  ;;  %v3344_v62 = vld [vmem:[#allocation2 + $0x204] sm:$0xf]  ;;  %v2548_v0 = vld [vmem:[#allocation2 + $0x210] sm:$0xf0]  ;;  %v2522_v35 = vld [vmem:[#allocation2 + $0x1c8] sm:$0xf] }
  0x49   :  { %v2551_v3 = vor.u32 %v3344_v62, %v2548_v0  ;;  %v3388_v5 = vld [vmem:[#allocation2 + $0x364] sm:$0xf]  ;;  %v2724_v6 = vld [vmem:[#allocation2 + $0x370] sm:$0xf0]  ;;  %v2523_v44 = vor.u32 %v3339_v36, %v2522_v35  ;;  %v3331_v62 = vld [vmem:[#allocation2 + $0x194] sm:$0xf0]  ;;  %v2395_v0 = vor.u32 %v3307_v56, %v2394_v55 }
  0x4a   :  { %1084 = vmatpush.bf16.msra.mxu1 %v2503_v63  ;;  %v2295_v63 = vor.u32 %v3280_v60, %v2292_v61  ;;  %v2727_v7 = vor.u32 %v3388_v5, %v2724_v6  ;;  %v2708_v9 = vld [vmem:[#allocation2 + $0x350] sm:$0xf0]  ;;  %v3376_v17 = vld [vmem:[#allocation2 + $0x304] sm:$0xf]  ;;  %v3371_v60 = vld [vmem:[#allocation2 + $0x2d4] sm:$0xf0] }
  0x4b   :  { %1071 = vmatpush.bf16.msrb.mxu0 %v2359_v19  ;;  %v2692_v12 = vld [vmem:[#allocation2 + $0x330] sm:$0xf0]  ;;  %v2490_v61 = vld [vmem:[#allocation2 + $0x188] sm:$0xf]  ;;  %v3367_v6 = vld [vmem:[#allocation2 + $0x2b4] sm:$0xf0] }
  0x4c   :  { %1098 = vmatpush.bf16.msra.mxu2 %v2631_v8  ;;  %1111 = vmatpush.bf16.msrb.mxu3 %v2775_v47  ;;  %v3384_v8 = vld [vmem:[#allocation2 + $0x344] sm:$0xf]  ;;  %v2676_v19 = vld [vmem:[#allocation2 + $0x310] sm:$0xf0]  ;;  %v2634_v5 = vld [vmem:[#allocation2 + $0x2a8] sm:$0xf] }
  0x4d   :  { %v2711_v10 = vor.u32 %v3384_v8, %v2708_v9  ;;  %v2679_v20 = vor.u32 %v3376_v17, %v2676_v19  ;;  %v2474_v8 = vld [vmem:[#allocation2 + $0x168] sm:$0xf]  ;;  %v3327_v9 = vld [vmem:[#allocation2 + $0x174] sm:$0xf0] }
  0x4e   :  { %1085 = vmatpush.bf16.msra.mxu1 %v2487_v2  ;;  %v2740_v2 = vld [vmem:[#allocation2 + $0x390] sm:$0xf0]  ;;  %v3363_v17 = vld [vmem:[#allocation2 + $0x294] sm:$0xf0]  ;;  %v2794_v30 = vld [vmem:[#allocation2 + $0x3e8] sm:$0xf] }
  0x4f   :  { %1072 = vmatpush.bf16.msrb.mxu0 %v2343_v31  ;;  %v2743_v4 = vor.u32 %v3392_v1, %v2740_v2  ;;  %v2378_v2 = vld [vmem:[#allocation2 + $0xa8] sm:$0xf]  ;;  %v3319_v35 = vld [vmem:[#allocation2 + $0x134] sm:$0xf0] }
  0x50   :  { %1099 = vmatpush.bf16.msra.mxu2 %v2615_v21  ;;  %1112 = vmatpush.bf16.msrb.mxu3 %v2759_v59  ;;  %v2650_v59 = vld [vmem:[#allocation2 + $0x2c8] sm:$0xf]  ;;  %v3291_v41 = vld [vmem:[#allocation2 + $0x54] sm:$0xf0] }
  0x51   :  { %v2651_v1 = vor.u32 %v3371_v60, %v2650_v59  ;;  %v2330_v40 = vld [vmem:[#allocation2 + $0x48] sm:$0xf]  ;;  %v3287_v56 = vld [vmem:[#allocation2 + $0x34] sm:$0xf0] }
  0x52   :  { %1086 = vmatpush.bf16.msra.mxu1 %v2471_v11  ;;  %v3380_v11 = vld [vmem:[#allocation2 + $0x324] sm:$0xf]  ;;  %v2314_v55 = vld [vmem:[#allocation2 + $0x28] sm:$0xf]  ;;  %v3351_v60 = vld [vmem:[#allocation2 + $0x234] sm:$0xf0] }
  0x53   :  { %1073 = vmatpush.bf16.msrb.mxu0 %v2327_v42  ;;  %v2695_v15 = vor.u32 %v3380_v11, %v2692_v12  ;;  %v2635_v11 = vor.u32 %v3367_v6, %v2634_v5  ;;  %v2362_v12 = vld [vmem:[#allocation2 + $0x88] sm:$0xf]  ;;  %v3283_v6 = vld [vmem:[#allocation2 + $0x14] sm:$0xf0] }
  0x54   :  { %1100 = vmatpush.bf16.msra.mxu2 %v2599_v34  ;;  %1113 = vmatpush.bf16.msrb.mxu3 %v2743_v4  ;;  %v2491_v4 = vor.u32 %v3331_v62, %v2490_v61  ;;  %v2762_v61 = vld [vmem:[#allocation2 + $0x3a8] sm:$0xf]  ;;  %v3399_v62 = vld [vmem:[#allocation2 + $0x3b4] sm:$0xf0] }
  0x55   :  { %v2763_v5 = vor.u32 %v3399_v62, %v2762_v61  ;;  %v2682_v61 = vld [vmem:[#allocation2 + $0x308] sm:$0xf] }
  0x56   :  { %1087 = vmatpush.bf16.msra.mxu1 %v2455_v24  ;;  %v133_v24 = vperm.slane %v3826_v13, 2 }
  0x57   :  { %1074 = vmatpush.bf16.msrb.mxu0 %v2311_v54 }
  0x58   :  { %1101 = vmatpush.bf16.msra.mxu2 %v2583_v46  ;;  %1114 = vmatpush.bf16.msrb.mxu3 %v2727_v7  ;;  %v3375_v46 = vld [vmem:[#allocation2 + $0x2f4] sm:$0xf0]  ;;  %v134_v7 = vperm.slane %v3826_v13, 3 }
  0x59   :  { %v2667_v54 = vor.u32 %v3375_v46, %v2666_v45  ;;  %v2778_v45 = vld [vmem:[#allocation2 + $0x3c8] sm:$0xf]  ;;  %v3403_v46 = vld [vmem:[#allocation2 + $0x3d4] sm:$0xf0] }
  0x5a   :  { %1088 = vmatpush.bf16.msra.mxu1 %v2439_v38 }
  0x5b   :  { %1075 = vmatpush.bf16.msrb.mxu0 %v2295_v63 }
  0x5c   :  { %1102 = vmatpush.bf16.msra.mxu2 %v2567_v58  ;;  %1115 = vmatpush.bf16.msrb.mxu3 %v2711_v10 }
  0x5e   :  { %1089 = vmatpush.bf16.msra.mxu1 %v2423_v50  ;;  %v3335_v50 = vld [vmem:[#allocation2 + $0x1b4] sm:$0xf0] }
  0x5f   :  { %v2507_v58 = vor.u32 %v3335_v50, %v2506_v49  ;;  %v2331_v49 = vor.u32 %v3291_v41, %v2330_v40  ;;  %v3341_v50 = vld [vmem:[#allocation2 + $0x1ec] sm:$0xf]  ;;  %v2380_v41 = vld [vmem:[#allocation2 + $0xb8] sm:$0xf0] }
  0x60   :  { %1103 = vmatpush.bf16.msra.mxu2 %v2551_v3  ;;  %1116 = vmatpush.bf16.msrb.mxu3 %v2695_v15  ;;  %v3303_v3 = vld [vmem:[#allocation2 + $0xb4] sm:$0xf0]  ;;  %v2475_v15 = vor.u32 %v3327_v9, %v2474_v8  ;;  %v2746_v9 = vld [vmem:[#allocation2 + $0x388] sm:$0xf] }
  0x61   :  { %v2379_v10 = vor.u32 %v3303_v3, %v2378_v2  ;;  %v2524_v2 = vld [vmem:[#allocation2 + $0x1d8] sm:$0xf0]  ;;  %v2298_v3 = vld [vmem:[#allocation2 + $0x8] sm:$0xf]  ;;  %v3347_v8 = vld [vmem:[#allocation2 + $0x214] sm:$0xf0] }
  0x64   :  { %1117 = vmatpush.bf16.msrb.mxu3 %v2679_v20  ;;  %v2458_v20 = vld [vmem:[#allocation2 + $0x148] sm:$0xf] }
  0x9e   :  { %v189_v14 = vpop.f32.mrf.mxu1 }
  0x9f   :  { %v190_v21 = vadd.f32 %v189_v14, %v132_v16  ;;  %v3299_v14 = vld [vmem:[#allocation2 + $0x94] sm:$0xf0] }
  0xa1   :  { %v223_v26 = vmax.f32 %v190_v21, 0.0  ;;  %v3323_v21 = vld [vmem:[#allocation2 + $0x154] sm:$0xf0] }
  0xa4   :  { %v175_v22 = vpop.f32.mrf.mxu3 }
  0xa5   :  { %v176_v18 = vadd.f32 %v175_v22, %v131_v27 }
  0xa6   :  { %v203_v23 = vpop.f32.mrf.mxu2  ;;  %v191_v25 = vpop.f32.mrf.mxu1 }
  0xa7   :  { %v192_v28 = vadd.f32 %v191_v25, %v132_v16  ;;  %v204_v32 = vadd.f32 %v203_v23, %v133_v24  ;;  %v222_v47 = vmax.f32 %v176_v18, 0.0  ;;  %v2618_v16 = vld [vmem:[#allocation2 + $0x288] sm:$0xf]  ;;  %v2363_v23 = vor.u32 %v3299_v14, %v2362_v12  ;;  %v2412_v14 = vld [vmem:[#allocation2 + $0xf8] sm:$0xf0] }
  0xa8   :  { %v2346_v25 = vld [vmem:[#allocation2 + $0x68] sm:$0xf] }
  0xa9   :  { %v227_v31 = vmax.f32 %v192_v28, 0.0  ;;  %v224_v42 = vmax.f32 %v204_v32, 0.0  ;;  %v2459_v28 = vor.u32 %v3323_v21, %v2458_v20  ;;  %v2442_v18 = vld [vmem:[#allocation2 + $0x128] sm:$0xf]  ;;  %v2508_v20 = vld [vmem:[#allocation2 + $0x1b8] sm:$0xf0] }
  0xab   :  { %v3831_v34 = vpack.c.bf16 %v227_v31, %v223_v26  ;;  %v3295_v26 = vld [vmem:[#allocation2 + $0x74] sm:$0xf0] }
  0xac   :  { %v177_v37 = vpop.f32.mrf.mxu3  ;;  %v3407_v31 = vld [vmem:[#allocation2 + $0x3f4] sm:$0xf0]  ;;  %v2347_v36 = vor.u32 %v3295_v26, %v2346_v25  ;;  %v3305_v26 = vld [vmem:[#allocation2 + $0xcc] sm:$0xf] }
  0xad   :  { %v178_v38 = vadd.f32 %v177_v37, %v131_v27  ;;  %1034 = vmatmul.bf16.vlgmr.msrb.gmra.mxu1 %v3831_v34  ;;  %v2602_v27 = vld [vmem:[#allocation2 + $0x268] sm:$0xf]  ;;  %v3391_v25 = vld [vmem:[#allocation2 + $0x374] sm:$0xf0] }
  0xae   :  { %v205_v39 = vpop.f32.mrf.mxu2  ;;  %1138 = vmatpush.bf16.msrb.mxu1 %v2539_v33 }
  0xaf   :  { %v206_v43 = vadd.f32 %v205_v39, %v133_v24  ;;  %v226_v48 = vmax.f32 %v178_v38, 0.0  ;;  %v2619_v24 = vor.u32 %v3363_v17, %v2618_v16  ;;  %v2603_v38 = vor.u32 %v3359_v29, %v2602_v27  ;;  %v2668_v16 = vld [vmem:[#allocation2 + $0x2f8] sm:$0xf0]  ;;  %v3369_v29 = vld [vmem:[#allocation2 + $0x2cc] sm:$0xf] }
  0xb0   :  { %v2795_v39 = vor.u32 %v3407_v31, %v2794_v30  ;;  %v2299_v17 = vor.u32 %v3283_v6, %v2298_v3  ;;  %v2652_v30 = vld [vmem:[#allocation2 + $0x2d8] sm:$0xf0]  ;;  %v3329_v31 = vld [vmem:[#allocation2 + $0x18c] sm:$0xf] }
  0xb1   :  { %v228_v51 = vmax.f32 %v206_v43, 0.0  ;;  %v3834_v53 = vpack.c.bf16 %v226_v48, %v222_v47  ;;  %v2443_v43 = vor.u32 %v3319_v35, %v2442_v18  ;;  %v2426_v47 = vld [vmem:[#allocation2 + $0x108] sm:$0xf]  ;;  %v3315_v48 = vld [vmem:[#allocation2 + $0x114] sm:$0xf0]  ;;  %v2655_v35 = vor.u32 %v3369_v29, %v2652_v30 }
  0xb2   :  { %1139 = vmatpush.bf16.msrb.mxu1 %v2523_v44  ;;  %v3355_v44 = vld [vmem:[#allocation2 + $0x254] sm:$0xf0]  ;;  %v2427_v59 = vor.u32 %v3315_v48, %v2426_v47  ;;  %v3405_v6 = vld [vmem:[#allocation2 + $0x3ec] sm:$0xf]  ;;  %v2316_v29 = vld [vmem:[#allocation2 + $0x38] sm:$0xf0] }
  0xb3   :  { %v3836_v57 = vpack.c.bf16 %v228_v51, %v224_v42  ;;  %1020 = vmatmul.bf16.vlgmr.msra.gmra.mxu0 %v3834_v53  ;;  %v2586_v42 = vld [vmem:[#allocation2 + $0x248] sm:$0xf]  ;;  %v2540_v51 = vld [vmem:[#allocation2 + $0x1f8] sm:$0xf0]  ;;  %v3349_v30 = vld [vmem:[#allocation2 + $0x22c] sm:$0xf] }
  0xb4   :  { %1124 = vmatpush.bf16.msra.mxu0 %v2411_v52  ;;  %v217_v63 = vpop.f32.mrf.mxu3  ;;  %v2587_v52 = vor.u32 %v3355_v44, %v2586_v42  ;;  %v3365_v42 = vld [vmem:[#allocation2 + $0x2ac] sm:$0xf] }
  0xb5   :  { %1048 = vmatmul.bf16.vlgmr.msrb.gmra.mxu2 %v3836_v57  ;;  %v218_v19 = vadd.f32 %v217_v63, %v134_v7  ;;  %v2543_v63 = vor.u32 %v3341_v50, %v2540_v51  ;;  %v3325_v44 = vld [vmem:[#allocation2 + $0x16c] sm:$0xf]  ;;  %v3383_v50 = vld [vmem:[#allocation2 + $0x334] sm:$0xf0] }
  0xb6   :  { %1152 = vmatpush.bf16.msrb.mxu2 %v2667_v54  ;;  %1140 = vmatpush.bf16.msrb.mxu1 %v2507_v58  ;;  %v2779_v54 = vor.u32 %v3403_v46, %v2778_v45  ;;  %v2570_v58 = vld [vmem:[#allocation2 + $0x228] sm:$0xf]  ;;  %v2476_v45 = vld [vmem:[#allocation2 + $0x178] sm:$0xf0]  ;;  %v3297_v51 = vld [vmem:[#allocation2 + $0x8c] sm:$0xf] }
  0xb7   :  { %v225_v32 = vmax.f32 %v218_v19, 0.0  ;;  %v3333_v19 = vld [vmem:[#allocation2 + $0x1ac] sm:$0xf] }
  0xb8   :  { %1125 = vmatpush.bf16.msra.mxu0 %v2395_v0  ;;  %v2315_v0 = vor.u32 %v3287_v56, %v2314_v55  ;;  %v2511_v27 = vor.u32 %v3333_v19, %v2508_v20  ;;  %v3361_v55 = vld [vmem:[#allocation2 + $0x28c] sm:$0xf]  ;;  %v2620_v56 = vld [vmem:[#allocation2 + $0x298] sm:$0xf0] }
  0xb9   :  { %v3353_v19 = vld [vmem:[#allocation2 + $0x24c] sm:$0xf]  ;;  %v2588_v20 = vld [vmem:[#allocation2 + $0x258] sm:$0xf0] }
  0xba   :  { %1153 = vmatpush.bf16.msrb.mxu2 %v2651_v1  ;;  %1141 = vmatpush.bf16.msrb.mxu1 %v2491_v4  ;;  %v3337_v1 = vld [vmem:[#allocation2 + $0x1cc] sm:$0xf]  ;;  %v2571_v4 = vor.u32 %v3351_v60, %v2570_v58 }
  0xbb   :  { %v2527_v12 = vor.u32 %v3337_v1, %v2524_v2  ;;  %v3321_v58 = vld [vmem:[#allocation2 + $0x14c] sm:$0xf]  ;;  %v2348_v2 = vld [vmem:[#allocation2 + $0x78] sm:$0xf0] }
  0xbc   :  { %1126 = vmatpush.bf16.msra.mxu0 %v2379_v10  ;;  %v219_v22 = vpop.f32.mrf.mxu3  ;;  %v3395_v10 = vld [vmem:[#allocation2 + $0x394] sm:$0xf0]  ;;  %v3293_v1 = vld [vmem:[#allocation2 + $0x6c] sm:$0xf] }
  0xbd   :  { %v220_v13 = vadd.f32 %v219_v22, %v134_v7  ;;  %1090 = vmatmul.bf16.vlgmr.msra.gmra.mxu1 %v3831_v34  ;;  %v2554_v7 = vld [vmem:[#allocation2 + $0x208] sm:$0xf]  ;;  %v2747_v22 = vor.u32 %v3395_v10, %v2746_v9  ;;  %v2444_v9 = vld [vmem:[#allocation2 + $0x138] sm:$0xf0] }
  0xbe   :  { %1154 = vmatpush.bf16.msrb.mxu2 %v2635_v11  ;;  %1142 = vmatpush.bf16.msrb.mxu1 %v2475_v15  ;;  %v3309_v11 = vld [vmem:[#allocation2 + $0xec] sm:$0xf]  ;;  %v2555_v21 = vor.u32 %v3347_v8, %v2554_v7  ;;  %v2796_v7 = vld [vmem:[#allocation2 + $0x3f8] sm:$0xf0] }
  0xbf   :  { %v229_v33 = vmax.f32 %v220_v13, 0.0  ;;  %v3373_v15 = vld [vmem:[#allocation2 + $0x2ec] sm:$0xf] }
  0xc0   :  { %1127 = vmatpush.bf16.msra.mxu0 %v2363_v23  ;;  %v2415_v23 = vor.u32 %v3309_v11, %v2412_v14  ;;  %v2671_v13 = vor.u32 %v3373_v15, %v2668_v16  ;;  %v3317_v8 = vld [vmem:[#allocation2 + $0x12c] sm:$0xf]  ;;  %v2351_v11 = vor.u32 %v3293_v1, %v2348_v2  ;;  %v2332_v15 = vld [vmem:[#allocation2 + $0x58] sm:$0xf0]  ;;  %v2799_v16 = vor.u32 %v3405_v6, %v2796_v7  ;;  %v3419_v2 = vld [vmem:[#allocation5 + $0x54] sm:$0xf0] }
  0xc1   :  { %v3842_v37 = vpack.c.bf16 %v229_v33, %v225_v32  ;;  %v2492_v32 = vld [vmem:[#allocation2 + $0x198] sm:$0xf0]  ;;  %v3289_v14 = vld [vmem:[#allocation2 + $0x4c] sm:$0xf]  ;;  %v2826_v6 = vld [vmem:[#allocation5 + $0x30] sm:$0xf] }
  0xc2   :  { %1155 = vmatpush.bf16.msrb.mxu2 %v2619_v24  ;;  %1143 = vmatpush.bf16.msrb.mxu1 %v2459_v28  ;;  %v2730_v24 = vld [vmem:[#allocation2 + $0x368] sm:$0xf]  ;;  %v2396_v28 = vld [vmem:[#allocation2 + $0xd8] sm:$0xf0]  ;;  %v2495_v40 = vor.u32 %v3329_v31, %v2492_v32  ;;  %v3397_v32 = vld [vmem:[#allocation2 + $0x3ac] sm:$0xf] }
  0xc3   :  { %1062 = vmatmul.bf16.vlgmr.msra.gmra.mxu3 %v3842_v37  ;;  %1076 = vmatmul.bf16.vlgmr.msrb.gmra.mxu0 %v3834_v53  ;;  %v2731_v33 = vor.u32 %v3391_v25, %v2730_v24  ;;  %v2399_v18 = vor.u32 %v3305_v26, %v2396_v28  ;;  %v2335_v24 = vor.u32 %v3289_v14, %v2332_v15  ;;  %v3285_v26 = vld [vmem:[#allocation2 + $0x2c] sm:$0xf]  ;;  %v2572_v31 = vld [vmem:[#allocation2 + $0x238] sm:$0xf0]  ;;  %v3415_v7 = vld [vmem:[#allocation5 + $0x34] sm:$0xf0] }
  0xc4   :  { %1128 = vmatpush.bf16.msra.mxu0 %v2347_v36  ;;  %1166 = vmatpush.bf16.msra.mxu3 %v2795_v39  ;;  %v2714_v36 = vld [vmem:[#allocation2 + $0x348] sm:$0xf]  ;;  %v3301_v39 = vld [vmem:[#allocation2 + $0xac] sm:$0xf]  ;;  %v2591_v25 = vor.u32 %v3353_v19, %v2588_v20  ;;  %v2914_v14 = vld [vmem:[#allocation5 + $0xe0] sm:$0xf] }
  0xc5   :  { %1104 = vmatmul.bf16.vlgmr.msra.gmra.mxu2 %v3836_v57  ;;  %v2383_v47 = vor.u32 %v3301_v39, %v2380_v41  ;;  %v2556_v41 = vld [vmem:[#allocation2 + $0x218] sm:$0xf0]  ;;  %v3437_v15 = vld [vmem:[#allocation5 + $0xe4] sm:$0xf0]  ;;  %v2810_v19 = vld [vmem:[#allocation5 + $0x10] sm:$0xf] }
  0xc6   :  { %1156 = vmatpush.bf16.msrb.mxu2 %v2603_v38  ;;  %1144 = vmatpush.bf16.msrb.mxu1 %v2443_v43  ;;  %v3387_v38 = vld [vmem:[#allocation2 + $0x354] sm:$0xf0]  ;;  %v2636_v43 = vld [vmem:[#allocation2 + $0x2b8] sm:$0xf0] }
  0xc7   :  { %v2715_v46 = vor.u32 %v3387_v38, %v2714_v36  ;;  %v2639_v48 = vor.u32 %v3365_v42, %v2636_v43  ;;  %v3281_v36 = vld [vmem:[#allocation2 + $0xc] sm:$0xf]  ;;  %v2300_v38 = vld [vmem:[#allocation2 + $0x18] sm:$0xf0]  ;;  %v3411_v20 = vld [vmem:[#allocation5 + $0x14] sm:$0xf0] }
  0xc8   :  { %1129 = vmatpush.bf16.msra.mxu0 %v2331_v49  ;;  %1167 = vmatpush.bf16.msra.mxu3 %v2779_v54  ;;  %v2698_v49 = vld [vmem:[#allocation2 + $0x328] sm:$0xf]  ;;  %v2364_v54 = vld [vmem:[#allocation2 + $0x98] sm:$0xf0]  ;;  %v3393_v42 = vld [vmem:[#allocation2 + $0x38c] sm:$0xf] }
  0xc9   :  { %v2699_v60 = vor.u32 %v3383_v50, %v2698_v49  ;;  %v2367_v62 = vor.u32 %v3297_v51, %v2364_v54  ;;  %v2748_v43 = vld [vmem:[#allocation2 + $0x398] sm:$0xf0]  ;;  %v3389_v50 = vld [vmem:[#allocation2 + $0x36c] sm:$0xf] }
  0xca   :  { %1157 = vmatpush.bf16.msrb.mxu2 %v2587_v52  ;;  %1145 = vmatpush.bf16.msrb.mxu1 %v2427_v59  ;;  %v2479_v52 = vor.u32 %v3325_v44, %v2476_v45  ;;  %v2460_v59 = vld [vmem:[#allocation2 + $0x158] sm:$0xf0]  ;;  %v2858_v44 = vld [vmem:[#allocation5 + $0x70] sm:$0xf]  ;;  %v3423_v45 = vld [vmem:[#allocation5 + $0x74] sm:$0xf0] }
  0xcb   :  { %v2463_v3 = vor.u32 %v3321_v58, %v2460_v59  ;;  %v2859_v49 = vor.u32 %v3423_v45, %v2858_v44  ;;  %v2732_v51 = vld [vmem:[#allocation2 + $0x378] sm:$0xf0]  ;;  %v3385_v54 = vld [vmem:[#allocation2 + $0x34c] sm:$0xf]  ;;  %v3429_v44 = vld [vmem:[#allocation5 + $0xa4] sm:$0xf0] }
  0xcc   :  { %1130 = vmatpush.bf16.msra.mxu0 %v2315_v0  ;;  %1168 = vmatpush.bf16.msra.mxu3 %v2763_v5  ;;  %v3379_v0 = vld [vmem:[#allocation2 + $0x314] sm:$0xf0]  ;;  %v2604_v5 = vld [vmem:[#allocation2 + $0x278] sm:$0xf0]  ;;  %v3381_v58 = vld [vmem:[#allocation2 + $0x32c] sm:$0xf] }
  0xcd   :  { %1146 = vmatmul.bf16.vlgmr.msrb.gmra.mxu1 %v3831_v34  ;;  %v2683_v10 = vor.u32 %v3379_v0, %v2682_v61  ;;  %v2700_v59 = vld [vmem:[#allocation2 + $0x338] sm:$0xf0]  ;;  %v3421_v0 = vld [vmem:[#allocation5 + $0x64] sm:$0xf0]  ;;  %v2978_v45 = vld [vmem:[#allocation5 + $0x160] sm:$0xf] }
  0xce   :  { %1194 = vmatpush.bf16.msra.mxu1 %v2543_v63  ;;  %1158 = vmatpush.bf16.msrb.mxu2 %v2571_v4  ;;  %v2623_v63 = vor.u32 %v3361_v55, %v2620_v56  ;;  %v3357_v4 = vld [vmem:[#allocation2 + $0x26c] sm:$0xf]  ;;  %v2716_v55 = vld [vmem:[#allocation2 + $0x358] sm:$0xf0] }
  0xcf   :  { %v2719_v56 = vor.u32 %v3385_v54, %v2716_v55  ;;  %v2684_v61 = vld [vmem:[#allocation2 + $0x318] sm:$0xf0]  ;;  %v3427_v54 = vld [vmem:[#allocation5 + $0x94] sm:$0xf0]  ;;  %v2970_v55 = vld [vmem:[#allocation5 + $0x150] sm:$0xf] }
  0xd0   :  { %1131 = vmatpush.bf16.msra.mxu0 %v2299_v17  ;;  %1169 = vmatpush.bf16.msra.mxu3 %v2747_v22  ;;  %v2447_v17 = vor.u32 %v3317_v8, %v2444_v9  ;;  %v2780_v22 = vld [vmem:[#allocation2 + $0x3d8] sm:$0xf0]  ;;  %v2922_v8 = vld [vmem:[#allocation5 + $0xf0] sm:$0xf]  ;;  %v2827_v9 = vor.u32 %v3415_v7, %v2826_v6  ;;  %v3438_v6 = vld [vmem:[#allocation5 + $0xf4] sm:$0xf] }
  0xd1   :  { %v2924_v7 = vld [vmem:[#allocation5 + $0xf8] sm:$0xf0] }
  0xd2   :  { %1195 = vmatpush.bf16.msra.mxu1 %v2527_v12  ;;  %1159 = vmatpush.bf16.msrb.mxu2 %v2555_v21  ;;  %v2607_v12 = vor.u32 %v3357_v4, %v2604_v5  ;;  %v3401_v21 = vld [vmem:[#allocation2 + $0x3cc] sm:$0xf]  ;;  %v3417_v4 = vld [vmem:[#allocation5 + $0x44] sm:$0xf0] }
  0xd3   :  { %1118 = vmatmul.bf16.vlgmr.msrb.gmra.mxu3 %v3842_v37  ;;  %1132 = vmatmul.bf16.vlgmr.msra.gmra.mxu0 %v3834_v53 }
  0xd4   :  { %1180 = vmatpush.bf16.msrb.mxu0 %v2415_v23  ;;  %1170 = vmatpush.bf16.msra.mxu3 %v2731_v33  ;;  %v3313_v23 = vld [vmem:[#allocation2 + $0x10c] sm:$0xf]  ;;  %v2764_v33 = vld [vmem:[#allocation2 + $0x3b8] sm:$0xf0] }
  0xd5   :  { %1160 = vmatmul.bf16.vlgmr.msrb.gmra.mxu2 %v3836_v57  ;;  %v2767_v39 = vor.u32 %v3397_v32, %v2764_v33  ;;  %v2890_v33 = vld [vmem:[#allocation5 + $0xb0] sm:$0xf] }
  0xd6   :  { %1208 = vmatpush.bf16.msra.mxu2 %v2671_v13  ;;  %1196 = vmatpush.bf16.msra.mxu1 %v2511_v27  ;;  %v2428_v13 = vld [vmem:[#allocation2 + $0x118] sm:$0xf0]  ;;  %v2783_v27 = vor.u32 %v3401_v21, %v2780_v22  ;;  %v2906_v21 = vld [vmem:[#allocation5 + $0xd0] sm:$0xf]  ;;  %v2811_v22 = vor.u32 %v3411_v20, %v2810_v19  ;;  %v2916_v19 = vld [vmem:[#allocation5 + $0xe8] sm:$0xf0] }
  0xd7   :  { %v2431_v28 = vor.u32 %v3313_v23, %v2428_v13  ;;  %v3435_v23 = vld [vmem:[#allocation5 + $0xd4] sm:$0xf0]  ;;  %v2802_v13 = vld [vmem:[#allocation5] sm:$0xf] }
  0xd8   :  { %1181 = vmatpush.bf16.msrb.mxu0 %v2399_v18  ;;  %1171 = vmatpush.bf16.msra.mxu3 %v2715_v46  ;;  %v2319_v18 = vor.u32 %v3285_v26, %v2316_v29  ;;  %v2303_v46 = vor.u32 %v3281_v36, %v2300_v38  ;;  %v2898_v26 = vld [vmem:[#allocation5 + $0xc0] sm:$0xf]  ;;  %v3455_v38 = vld [vmem:[#allocation5 + $0x174] sm:$0xf0] }
  0xd9   :  { %v2946_v20 = vld [vmem:[#allocation5 + $0x120] sm:$0xf] }
  0xda   :  { %1209 = vmatpush.bf16.msra.mxu2 %v2655_v35  ;;  %1197 = vmatpush.bf16.msra.mxu1 %v2495_v40  ;;  %v2575_v35 = vor.u32 %v3349_v30, %v2572_v31  ;;  %v3345_v40 = vld [vmem:[#allocation2 + $0x20c] sm:$0xf]  ;;  %v3422_v30 = vld [vmem:[#allocation5 + $0x74] sm:$0xf]  ;;  %v2860_v31 = vld [vmem:[#allocation5 + $0x78] sm:$0xf0] }
  0xdb   :  { %v2863_v32 = vor.u32 %v3422_v30, %v2860_v31 }
  0xdc   :  { %1182 = vmatpush.bf16.msrb.mxu0 %v2383_v47  ;;  %1172 = vmatpush.bf16.msra.mxu3 %v2699_v60  ;;  %v2559_v47 = vor.u32 %v3345_v40, %v2556_v41  ;;  %v3377_v60 = vld [vmem:[#allocation2 + $0x30c] sm:$0xf] }
  0xdd   :  { %v2852_v40 = vld [vmem:[#allocation5 + $0x68] sm:$0xf0] }
  0xde   :  { %1210 = vmatpush.bf16.msra.mxu2 %v2639_v48  ;;  %1198 = vmatpush.bf16.msra.mxu1 %v2479_v52  ;;  %v2751_v48 = vor.u32 %v3393_v42, %v2748_v43  ;;  %v2735_v52 = vor.u32 %v3389_v50, %v2732_v51  ;;  %v2882_v43 = vld [vmem:[#allocation5 + $0xa0] sm:$0xf]  ;;  %v2844_v50 = vld [vmem:[#allocation5 + $0x58] sm:$0xf0] }
  0xe0   :  { %1183 = vmatpush.bf16.msrb.mxu0 %v2367_v62  ;;  %1173 = vmatpush.bf16.msra.mxu3 %v2683_v10  ;;  %v2687_v62 = vor.u32 %v3377_v60, %v2684_v61  ;;  %v3439_v10 = vld [vmem:[#allocation5 + $0xf4] sm:$0xf0]  ;;  %v2836_v61 = vld [vmem:[#allocation5 + $0x48] sm:$0xf0] }
  0xe2   :  { %1211 = vmatpush.bf16.msra.mxu2 %v2623_v63  ;;  %1199 = vmatpush.bf16.msra.mxu1 %v2463_v3  ;;  %v2850_v63 = vld [vmem:[#allocation5 + $0x60] sm:$0xf] }
  0xe3   :  { %1174 = vmatmul.bf16.vlgmr.msra.gmra.mxu3 %v3842_v37  ;;  %v2851_v1 = vor.u32 %v3421_v0, %v2850_v63  ;;  %v2834_v3 = vld [vmem:[#allocation5 + $0x40] sm:$0xf]  ;;  %v3425_v0 = vld [vmem:[#allocation5 + $0x84] sm:$0xf0] }
  0xe4   :  { %1184 = vmatpush.bf16.msrb.mxu0 %v2351_v11  ;;  %1222 = vmatpush.bf16.msrb.mxu3 %v2799_v16  ;;  %v2835_v5 = vor.u32 %v3417_v4, %v2834_v3  ;;  %v2818_v11 = vld [vmem:[#allocation5 + $0x20] sm:$0xf]  ;;  %v2828_v3 = vld [vmem:[#allocation5 + $0x38] sm:$0xf0] }
  0xe5   :  { %v2866_v63 = vld [vmem:[#allocation5 + $0x80] sm:$0xf] }
  0xe6   :  { %1212 = vmatpush.bf16.msra.mxu2 %v2607_v12  ;;  %1200 = vmatpush.bf16.msra.mxu1 %v2447_v17  ;;  %v3413_v12 = vld [vmem:[#allocation5 + $0x24] sm:$0xf0]  ;;  %v2915_v17 = vor.u32 %v3437_v15, %v2914_v14  ;;  %v3412_v14 = vld [vmem:[#allocation5 + $0x24] sm:$0xf]  ;;  %v2820_v15 = vld [vmem:[#allocation5 + $0x28] sm:$0xf0] }
  0xe7   :  { %v2819_v16 = vor.u32 %v3413_v12, %v2818_v11  ;;  %v2954_v11 = vld [vmem:[#allocation5 + $0x130] sm:$0xf]  ;;  %v3447_v12 = vld [vmem:[#allocation5 + $0x134] sm:$0xf0] }
  0xe8   :  { %1185 = vmatpush.bf16.msrb.mxu0 %v2335_v24  ;;  %1223 = vmatpush.bf16.msrb.mxu3 %v2783_v27  ;;  %v3409_v24 = vld [vmem:[#allocation5 + $0x4] sm:$0xf0] }
  0xe9   :  { %v3433_v27 = vld [vmem:[#allocation5 + $0xc4] sm:$0xf0] }
  0xea   :  { %1213 = vmatpush.bf16.msra.mxu2 %v2591_v25  ;;  %1201 = vmatpush.bf16.msra.mxu1 %v2431_v28  ;;  %v2907_v25 = vor.u32 %v3435_v23, %v2906_v21  ;;  %v2803_v28 = vor.u32 %v3409_v24, %v2802_v13  ;;  %v2899_v29 = vor.u32 %v3433_v27, %v2898_v26  ;;  %v3445_v21 = vld [vmem:[#allocation5 + $0x124] sm:$0xf0]  ;;  %v3865_v23 = vld [vmem:[%s3896_s4] sm:$0xf]  ;;  %v2812_v26 = vld [vmem:[#allocation5 + $0x18] sm:$0xf0] }
  0xeb   :  { %v2947_v24 = vor.u32 %v3445_v21, %v2946_v20  ;;  %v3434_v27 = vld [vmem:[#allocation5 + $0xd4] sm:$0xf]  ;;  %v364_v31 = vperm.slane %v3865_v23, 0  ;;  %v2972_v21 = vld [vmem:[#allocation5 + $0x158] sm:$0xf0] }
  0xec   :  { %1186 = vmatpush.bf16.msrb.mxu0 %v2319_v18  ;;  %1224 = vmatpush.bf16.msrb.mxu3 %v2767_v39  ;;  %v3431_v18 = vld [vmem:[#allocation5 + $0xb4] sm:$0xf0]  ;;  %v3420_v39 = vld [vmem:[#allocation5 + $0x64] sm:$0xf] }
  0xed   :  { %1202 = vmatmul.bf16.vlgmr.msra.gmra.mxu1 %v3831_v34  ;;  %v2703_v34 = vor.u32 %v3381_v58, %v2700_v59  ;;  %v2891_v36 = vor.u32 %v3431_v18, %v2890_v33  ;;  %v2855_v42 = vor.u32 %v3420_v39, %v2852_v40  ;;  %v3451_v58 = vld [vmem:[#allocation5 + $0x154] sm:$0xf0]  ;;  %v3416_v59 = vld [vmem:[#allocation5 + $0x44] sm:$0xf] }
  0xee   :  { %1214 = vmatpush.bf16.msra.mxu2 %v2575_v35  ;;  %v2986_v35 = vld [vmem:[#allocation5 + $0x170] sm:$0xf]  ;;  %v2971_v60 = vor.u32 %v3451_v58, %v2970_v55  ;;  %v3443_v33 = vld [vmem:[#allocation5 + $0x114] sm:$0xf0] }
  0xef   :  { %v2987_v41 = vor.u32 %v3455_v38, %v2986_v35  ;;  %v3408_v35 = vld [vmem:[#allocation5 + $0x4] sm:$0xf] }
  0xf0   :  { %1187 = vmatpush.bf16.msrb.mxu0 %v2303_v46  ;;  %1225 = vmatpush.bf16.msrb.mxu3 %v2751_v48  ;;  %v3453_v46 = vld [vmem:[#allocation5 + $0x164] sm:$0xf0]  ;;  %v3432_v38 = vld [vmem:[#allocation5 + $0xc4] sm:$0xf] }
  0xf1   :  { %v2979_v48 = vor.u32 %v3453_v46, %v2978_v45  ;;  %v2930_v45 = vld [vmem:[#allocation5 + $0x100] sm:$0xf]  ;;  %v3441_v46 = vld [vmem:[#allocation5 + $0x104] sm:$0xf0] }
  0xf2   :  { %1215 = vmatpush.bf16.msra.mxu2 %v2559_v47  ;;  %v2883_v47 = vor.u32 %v3429_v44, %v2882_v43 }
  0xf3   :  { %1188 = vmatmul.bf16.vlgmr.msrb.gmra.mxu0 %v3834_v53  ;;  %v2842_v53 = vld [vmem:[#allocation5 + $0x50] sm:$0xf] }
  0xf4   :  { %1638 = vmatpush.bf16.msra.mxu0 %v2859_v49  ;;  %1226 = vmatpush.bf16.msrb.mxu3 %v2735_v52  ;;  %v3418_v49 = vld [vmem:[#allocation5 + $0x54] sm:$0xf]  ;;  %v2874_v52 = vld [vmem:[#allocation5 + $0x90] sm:$0xf] }
  0xf5   :  { %1216 = vmatmul.bf16.vlgmr.msra.gmra.mxu2 %v3836_v57  ;;  %v2843_v57 = vor.u32 %v3419_v2, %v2842_v53  ;;  %v2847_v51 = vor.u32 %v3418_v49, %v2844_v50  ;;  %v2867_v53 = vor.u32 %v3425_v0, %v2866_v63  ;;  %v3449_v2 = vld [vmem:[#allocation5 + $0x144] sm:$0xf0]  ;;  %v2931_v49 = vor.u32 %v3441_v46, %v2930_v45  ;;  %v3471_v50 = vld [vmem:[#allocation5 + $0x1f4] sm:$0xf0] }
  0xf6   :  { %1666 = vmatpush.bf16.msrb.mxu2 %v2987_v41  ;;  %v3469_v63 = vld [vmem:[#allocation5 + $0x1e4] sm:$0xf0] }
  0xf8   :  { %1227 = vmatpush.bf16.msrb.mxu3 %v2719_v56  ;;  %1639 = vmatpush.bf16.msra.mxu0 %v2851_v1  ;;  %v2875_v56 = vor.u32 %v3427_v54, %v2874_v52  ;;  %v2962_v1 = vld [vmem:[#allocation5 + $0x140] sm:$0xf]  ;;  %v2892_v52 = vld [vmem:[#allocation5 + $0xb8] sm:$0xf0] }
  0xf9   :  { %v2963_v4 = vor.u32 %v3449_v2, %v2962_v1  ;;  %v3428_v1 = vld [vmem:[#allocation5 + $0xa4] sm:$0xf] }
  0xfa   :  { %1667 = vmatpush.bf16.msrb.mxu2 %v2979_v48  ;;  %v3452_v2 = vld [vmem:[#allocation5 + $0x164] sm:$0xf] }
  0xfc   :  { %1228 = vmatpush.bf16.msrb.mxu3 %v2703_v34  ;;  %1640 = vmatpush.bf16.msra.mxu0 %v2843_v57  ;;  %v3414_v57 = vld [vmem:[#allocation5 + $0x34] sm:$0xf] }
  0xfe   :  { %1668 = vmatpush.bf16.msrb.mxu2 %v2971_v60  ;;  %v2988_v60 = vld [vmem:[#allocation5 + $0x178] sm:$0xf0] }
 0x100   :  { %1229 = vmatpush.bf16.msrb.mxu3 %v2687_v62  ;;  %1641 = vmatpush.bf16.msra.mxu0 %v2835_v5  ;;  %v2839_v62 = vor.u32 %v3416_v59, %v2836_v61  ;;  %v2831_v5 = vor.u32 %v3414_v57, %v2828_v3  ;;  %v3454_v59 = vld [vmem:[#allocation5 + $0x174] sm:$0xf] }
 0x101   :  { %v2991_v61 = vor.u32 %v3454_v59, %v2988_v60 }
 0x102   :  { %1669 = vmatpush.bf16.msrb.mxu2 %v2963_v4 }
 0x103   :  { %1230 = vmatmul.bf16.vlgmr.msrb.gmra.mxu3 %v3842_v37  ;;  %v2923_v37 = vor.u32 %v3439_v10, %v2922_v8  ;;  %v2927_v8 = vor.u32 %v3438_v6, %v2924_v7 }
 0x104   :  { %1642 = vmatpush.bf16.msra.mxu0 %v2827_v9 }
 0x105   :  { %1652 = vmatpush.bf16.msrb.mxu1 %v2923_v37  ;;  %v2955_v37 = vor.u32 %v3447_v12, %v2954_v11  ;;  %v3034_v12 = vld [vmem:[#allocation5 + $0x1d0] sm:$0xf] }
 0x107   :  { %1670 = vmatpush.bf16.msrb.mxu2 %v2955_v37  ;;  %v3467_v37 = vld [vmem:[#allocation5 + $0x1d4] sm:$0xf0] }
 0x108   :  { %1643 = vmatpush.bf16.msra.mxu0 %v2819_v16  ;;  %v3436_v16 = vld [vmem:[#allocation5 + $0xe4] sm:$0xf] }
 0x109   :  { %1653 = vmatpush.bf16.msrb.mxu1 %v2915_v17  ;;  %v2823_v17 = vor.u32 %v3412_v14, %v2820_v15  ;;  %v3035_v15 = vor.u32 %v3467_v37, %v3034_v12  ;;  %v3440_v37 = vld [vmem:[#allocation5 + $0x104] sm:$0xf] }
 0x10b   :  { %1671 = vmatpush.bf16.msrb.mxu2 %v2947_v24 }
 0x10c   :  { %1644 = vmatpush.bf16.msra.mxu0 %v2811_v22  ;;  %v2919_v22 = vor.u32 %v3436_v16, %v2916_v19  ;;  %v3426_v16 = vld [vmem:[#allocation5 + $0x94] sm:$0xf] }
 0x10d   :  { %1654 = vmatpush.bf16.msrb.mxu1 %v2907_v25  ;;  %v3410_v25 = vld [vmem:[#allocation5 + $0x14] sm:$0xf] }
 0x10e   :  { %v3450_v19 = vld [vmem:[#allocation5 + $0x154] sm:$0xf] }
 0x110   :  { %1645 = vmatpush.bf16.msra.mxu0 %v2803_v28  ;;  %v2815_v28 = vor.u32 %v3410_v25, %v2812_v26 }
 0x111   :  { %1655 = vmatpush.bf16.msrb.mxu1 %v2899_v29  ;;  %v2908_v29 = vld [vmem:[#allocation5 + $0xd8] sm:$0xf0] }
 0x112   :  { %v2911_v30 = vor.u32 %v3434_v27, %v2908_v29  ;;  %v3026_v27 = vld [vmem:[#allocation5 + $0x1c0] sm:$0xf] }
 0x114   :  { %1694 = vmatpush.bf16.msrb.mxu0 %v2863_v32  ;;  %v2938_v32 = vld [vmem:[#allocation5 + $0x110] sm:$0xf] }
 0x115   :  { %1656 = vmatpush.bf16.msrb.mxu1 %v2891_v36  ;;  %v2939_v18 = vor.u32 %v3443_v33, %v2938_v32  ;;  %v2804_v36 = vld [vmem:[#allocation5 + $0x8] sm:$0xf0]  ;;  %v3448_v32 = vld [vmem:[#allocation5 + $0x144] sm:$0xf] }
 0x116   :  { %v2807_v41 = vor.u32 %v3408_v35, %v2804_v36  ;;  %v2964_v35 = vld [vmem:[#allocation5 + $0x148] sm:$0xf0] }
 0x117   :  { %1672 = vmatpush.bf16.msrb.mxu2 %v2939_v18  ;;  %v2967_v36 = vor.u32 %v3448_v32, %v2964_v35 }
 0x118   :  { %1695 = vmatpush.bf16.msrb.mxu0 %v2855_v42  ;;  %v2900_v42 = vld [vmem:[#allocation5 + $0xc8] sm:$0xf0] }
 0x119   :  { %1657 = vmatpush.bf16.msrb.mxu1 %v2883_v47  ;;  %v2903_v43 = vor.u32 %v3432_v38, %v2900_v42  ;;  %v3050_v47 = vld [vmem:[#allocation5 + $0x1f0] sm:$0xf] }
 0x11b   :  { %1673 = vmatpush.bf16.msrb.mxu2 %v2931_v49  ;;  %v3010_v49 = vld [vmem:[#allocation5 + $0x1a0] sm:$0xf] }
 0x11c   :  { %1696 = vmatpush.bf16.msrb.mxu0 %v2847_v51  ;;  %v3430_v51 = vld [vmem:[#allocation5 + $0xb4] sm:$0xf] }
 0x11d   :  { %1658 = vmatpush.bf16.msrb.mxu1 %v2875_v56  ;;  %v3051_v56 = vor.u32 %v3471_v50, %v3050_v47  ;;  %v2895_v58 = vor.u32 %v3430_v51, %v2892_v52  ;;  %v3461_v50 = vld [vmem:[#allocation5 + $0x1a4] sm:$0xf0] }
 0x11e   :  { %v3011_v52 = vor.u32 %v3461_v50, %v3010_v49  ;;  %v3460_v49 = vld [vmem:[#allocation5 + $0x1a4] sm:$0xf]  ;;  %v3012_v50 = vld [vmem:[#allocation5 + $0x1a8] sm:$0xf0] }
 0x11f   :  { %1680 = vmatpush.bf16.msra.mxu3 %v3051_v56  ;;  %1722 = vmatpush.bf16.msra.mxu2 %v2991_v61 }
 0x120   :  { %1697 = vmatpush.bf16.msrb.mxu0 %v2839_v62  ;;  %v3042_v62 = vld [vmem:[#allocation5 + $0x1e0] sm:$0xf] }
 0x121   :  { %1659 = vmatpush.bf16.msrb.mxu1 %v2867_v53  ;;  %v3043_v0 = vor.u32 %v3469_v63, %v3042_v62  ;;  %v2884_v53 = vld [vmem:[#allocation5 + $0xa8] sm:$0xf0]  ;;  %v3002_v62 = vld [vmem:[#allocation5 + $0x190] sm:$0xf]  ;;  %v3459_v63 = vld [vmem:[#allocation5 + $0x194] sm:$0xf0] }
 0x122   :  { %v2887_v4 = vor.u32 %v3428_v1, %v2884_v53  ;;  %v3003_v53 = vor.u32 %v3459_v63, %v3002_v62  ;;  %v367_v62 = vperm.slane %v3865_v23, 3 }
 0x123   :  { %1681 = vmatpush.bf16.msra.mxu3 %v3043_v0  ;;  %v3442_v0 = vld [vmem:[#allocation5 + $0x114] sm:$0xf] }
 0x124   :  { %1698 = vmatpush.bf16.msrb.mxu0 %v2831_v5  ;;  %v2980_v5 = vld [vmem:[#allocation5 + $0x168] sm:$0xf0] }
 0x125   :  { %1708 = vmatpush.bf16.msra.mxu1 %v2927_v8  ;;  %v2983_v6 = vor.u32 %v3452_v2, %v2980_v5  ;;  %v2940_v2 = vld [vmem:[#allocation5 + $0x118] sm:$0xf0]  ;;  %v3457_v5 = vld [vmem:[#allocation5 + $0x184] sm:$0xf0] }
 0x127   :  { %1723 = vmatpush.bf16.msra.mxu2 %v2983_v6  ;;  %1682 = vmatpush.bf16.msra.mxu3 %v3035_v15  ;;  %v3470_v15 = vld [vmem:[#allocation5 + $0x1f4] sm:$0xf] }
 0x128   :  { %1699 = vmatpush.bf16.msrb.mxu0 %v2823_v17  ;;  %v2876_v17 = vld [vmem:[#allocation5 + $0x98] sm:$0xf0] }
 0x129   :  { %1709 = vmatpush.bf16.msra.mxu1 %v2919_v22  ;;  %v365_v22 = vperm.slane %v3865_v23, 1 }
 0x12a   :  { %v3858_v9 = vpop.f32.mrf.mxu1 }
 0x12c   :  { %1700 = vmatpush.bf16.msrb.mxu0 %v2815_v28  ;;  %v3465_v28 = vld [vmem:[#allocation5 + $0x1c4] sm:$0xf0] }
 0x12d   :  { %1710 = vmatpush.bf16.msra.mxu1 %v2911_v30  ;;  %v3027_v29 = vor.u32 %v3465_v28, %v3026_v27  ;;  %v3424_v30 = vld [vmem:[#allocation5 + $0x84] sm:$0xf]  ;;  %v3466_v28 = vld [vmem:[#allocation5 + $0x1d4] sm:$0xf] }
 0x12f   :  { %1683 = vmatpush.bf16.msra.mxu3 %v3027_v29  ;;  %v3036_v29 = vld [vmem:[#allocation5 + $0x1d8] sm:$0xf0] }
 0x130   :  { %v3856_v34 = vpop.f32.mrf.mxu0  ;;  %1701 = vmatpush.bf16.msrb.mxu0 %v2807_v41  ;;  %v3039_v32 = vor.u32 %v3466_v28, %v3036_v29  ;;  %v3100_v29 = vld [vmem:[#allocation7 + $0x58] sm:$0xf0] }
 0x131   :  { %v1022_v44 = vadd.f32 %v3856_v34, %v364_v31  ;;  %1711 = vmatpush.bf16.msra.mxu1 %v2903_v43  ;;  %v3446_v43 = vld [vmem:[#allocation5 + $0x134] sm:$0xf] }
 0x132   :  { %v1037_v39 = vpop.f32.mrf.mxu1 }
 0x133   :  { %v1036_v34 = vadd.f32 %v3858_v9, %v1022_v44  ;;  %v2956_v44 = vld [vmem:[#allocation5 + $0x138] sm:$0xf0] }
 0x135   :  { %1712 = vmatpush.bf16.msra.mxu1 %v2895_v58 }
 0x138   :  { %v3860_v10 = vpop.f32.mrf.mxu2  ;;  %v1023_v13 = vpop.f32.mrf.mxu0 }
 0x139   :  { %v1024_v54 = vadd.f32 %v1023_v13, %v364_v31  ;;  %v1050_v57 = vadd.f32 %v3860_v10, %v1036_v34  ;;  %1713 = vmatpush.bf16.msra.mxu1 %v2887_v4  ;;  %v2879_v10 = vor.u32 %v3426_v16, %v2876_v17  ;;  %v2975_v13 = vor.u32 %v3450_v19, %v2972_v21  ;;  %v2868_v31 = vld [vmem:[#allocation5 + $0x88] sm:$0xf0]  ;;  %v2994_v4 = vld [vmem:[#allocation5 + $0x180] sm:$0xf]  ;;  %v3052_v19 = vld [vmem:[#allocation5 + $0x1f8] sm:$0xf0] }
 0x13a   :  { %v1091_v7 = vpop.f32.mrf.mxu1  ;;  %v2871_v18 = vor.u32 %v3424_v30, %v2868_v31  ;;  %v2995_v12 = vor.u32 %v3457_v5, %v2994_v4 }
 0x13b   :  { %v1038_v3 = vadd.f32 %v1037_v39, %v1024_v54  ;;  %1724 = vmatpush.bf16.msra.mxu2 %v2975_v13  ;;  %v3018_v39 = vld [vmem:[#allocation5 + $0x1b0] sm:$0xf]  ;;  %v3444_v54 = vld [vmem:[#allocation5 + $0x124] sm:$0xf]  ;;  %v3044_v13 = vld [vmem:[#allocation5 + $0x1e8] sm:$0xf0] }
 0x13d   :  { %1714 = vmatpush.bf16.msra.mxu1 %v2879_v10 }
 0x13f   :  { %1725 = vmatpush.bf16.msra.mxu2 %v2967_v36 }
 0x140   :  { %v1051_v40 = vpop.f32.mrf.mxu2  ;;  %v1077_v55 = vpop.f32.mrf.mxu0 }
 0x141   :  { %v1052_v8 = vadd.f32 %v1051_v40, %v1038_v3  ;;  %v1078_v38 = vadd.f32 %v1077_v55, %v365_v22  ;;  %v3463_v40 = vld [vmem:[#allocation5 + $0x1b4] sm:$0xf0]  ;;  %1715 = vmatpush.bf16.msra.mxu1 %v2871_v18  ;;  %v2948_v55 = vld [vmem:[#allocation5 + $0x128] sm:$0xf0]  ;;  %v2943_v3 = vor.u32 %v3442_v0, %v2940_v2 }
 0x142   :  { %v3019_v42 = vor.u32 %v3463_v40, %v3018_v39  ;;  %v1093_v45 = vpop.f32.mrf.mxu1  ;;  %v2951_v60 = vor.u32 %v3444_v54, %v2948_v55  ;;  %v3028_v39 = vld [vmem:[#allocation5 + $0x1c8] sm:$0xf0]  ;;  %v3004_v54 = vld [vmem:[#allocation5 + $0x198] sm:$0xf0] }
 0x143   :  { %v1092_v51 = vadd.f32 %v1091_v7, %v1078_v38  ;;  %v366_v7 = vperm.slane %v3865_v23, 2  ;;  %v3464_v38 = vld [vmem:[#allocation5 + $0x1c4] sm:$0xf]  ;;  %v3114_v23 = vld [vmem:[#allocation7 + $0x70] sm:$0xf] }
 0x144   :  { %1684 = vmatpush.bf16.msra.mxu3 %v3019_v42 }
 0x146   :  { %v1063_v48 = vpop.f32.mrf.mxu3 }
 0x147   :  { %v1064_v11 = vadd.f32 %v1063_v48, %v1050_v57  ;;  %v2959_v48 = vor.u32 %v3446_v43, %v2956_v44 }
 0x148   :  { %v1105_v9 = vpop.f32.mrf.mxu2  ;;  %v1079_v25 = vpop.f32.mrf.mxu0  ;;  %1685 = vmatpush.bf16.msra.mxu3 %v3011_v52  ;;  %v3458_v52 = vld [vmem:[#allocation5 + $0x194] sm:$0xf] }
 0x149   :  { %v1236_v24 = vmax.f32 %v1064_v11, 0.0  ;;  %v1080_v46 = vadd.f32 %v1079_v25, %v365_v22  ;;  %1726 = vmatpush.bf16.msra.mxu2 %v2959_v48  ;;  %v1106_v56 = vadd.f32 %v1105_v9, %v1092_v51  ;;  %v3468_v22 = vld [vmem:[#allocation5 + $0x1e4] sm:$0xf]  ;;  %v3015_v51 = vor.u32 %v3460_v49, %v3012_v50  ;;  %v3074_v50 = vld [vmem:[#allocation7 + $0x20] sm:$0xf] }
 0x14a   :  { %v1147_v6 = vpop.f32.mrf.mxu1  ;;  %v3047_v25 = vor.u32 %v3468_v22, %v3044_v13  ;;  %v3108_v13 = vld [vmem:[#allocation7 + $0x68] sm:$0xf0] }
 0x14b   :  { %v1094_v58 = vadd.f32 %v1093_v45, %v1080_v46  ;;  %v3462_v45 = vld [vmem:[#allocation5 + $0x1b4] sm:$0xf]  ;;  %v3020_v46 = vld [vmem:[#allocation5 + $0x1b8] sm:$0xf0] }
 0x14c   :  { %1686 = vmatpush.bf16.msra.mxu3 %v3003_v53 }
 0x14d   :  { %1727 = vmatpush.bf16.msra.mxu2 %v2951_v60 }
 0x14e   :  { %v1065_v14 = vpop.f32.mrf.mxu3 }
 0x14f   :  { %v1066_v20 = vadd.f32 %v1065_v14, %v1052_v8  ;;  %v2932_v14 = vld [vmem:[#allocation5 + $0x108] sm:$0xf0] }
 0x150   :  { %v1107_v47 = vpop.f32.mrf.mxu2  ;;  %v1133_v59 = vpop.f32.mrf.mxu0  ;;  %v2935_v17 = vor.u32 %v3440_v37, %v2932_v14  ;;  %1687 = vmatpush.bf16.msra.mxu3 %v2995_v12  ;;  %v3487_v14 = vld [vmem:[#allocation7 + $0x74] sm:$0xf0] }
 0x151   :  { %v1240_v26 = vmax.f32 %v1066_v20, 0.0  ;;  %v1108_v61 = vadd.f32 %v1107_v47, %v1094_v58  ;;  %1728 = vmatpush.bf16.msra.mxu2 %v2943_v3  ;;  %v3055_v20 = vor.u32 %v3470_v15, %v3052_v19  ;;  %v1134_v21 = vadd.f32 %v1133_v59, %v366_v7  ;;  %v3456_v58 = vld [vmem:[#allocation5 + $0x184] sm:$0xf]  ;;  %v2996_v59 = vld [vmem:[#allocation5 + $0x188] sm:$0xf0] }
 0x152   :  { %v1149_v30 = vpop.f32.mrf.mxu1  ;;  %v3023_v47 = vor.u32 %v3462_v45, %v3020_v46  ;;  %v3486_v15 = vld [vmem:[#allocation7 + $0x74] sm:$0xf] }
 0x153   :  { %v1244_v33 = vpack.c.bf16 %v1240_v26, %v1236_v24  ;;  %v1148_v27 = vadd.f32 %v1147_v6, %v1134_v21  ;;  %v3484_v21 = vld [vmem:[#allocation7 + $0x64] sm:$0xf] }
 0x154   :  { %1736 = vmatpush.bf16.msrb.mxu3 %v3055_v20  ;;  %v3106_v20 = vld [vmem:[#allocation7 + $0x60] sm:$0xf] }
 0x155   :  { %1646 = vmatmul.bf16.vlgmr.msra.gmra.mxu0 %v1244_v33  ;;  %1729 = vmatpush.bf16.msra.mxu2 %v2935_v17  ;;  %v3116_v17 = vld [vmem:[#allocation7 + $0x78] sm:$0xf0] }
 0x156   :  { %v1119_v41 = vpop.f32.mrf.mxu3  ;;  %v3119_v19 = vor.u32 %v3486_v15, %v3116_v17  ;;  %v3060_v15 = vld [vmem:[#allocation7 + $0x8] sm:$0xf0] }
 0x157   :  { %v1120_v34 = vadd.f32 %v1119_v41, %v1106_v56  ;;  %v3031_v41 = vor.u32 %v3464_v38, %v3028_v39  ;;  %v3007_v56 = vor.u32 %v3458_v52, %v3004_v54  ;;  %v3082_v38 = vld [vmem:[#allocation7 + $0x30] sm:$0xf]  ;;  %v3479_v39 = vld [vmem:[#allocation7 + $0x34] sm:$0xf0]  ;;  %v3170_v52 = vld [vmem:[#allocation7 + $0xe0] sm:$0xf] }
 0x158   :  { %v1161_v11 = vpop.f32.mrf.mxu2  ;;  %v1135_v10 = vpop.f32.mrf.mxu0  ;;  %1737 = vmatpush.bf16.msrb.mxu3 %v3047_v25  ;;  %v3098_v25 = vld [vmem:[#allocation7 + $0x50] sm:$0xf] }
 0x159   :  { %v1237_v8 = vmax.f32 %v1120_v34, 0.0  ;;  %v1136_v26 = vadd.f32 %v1135_v10, %v366_v7  ;;  %v1162_v18 = vadd.f32 %v1161_v11, %v1148_v27  ;;  %v2999_v34 = vor.u32 %v3456_v58, %v2996_v59  ;;  %v3485_v10 = vld [vmem:[#allocation7 + $0x64] sm:$0xf0]  ;;  %v3482_v27 = vld [vmem:[#allocation7 + $0x54] sm:$0xf] }
 0x15a   :  { %v3107_v22 = vor.u32 %v3485_v10, %v3106_v20  ;;  %v3076_v58 = vld [vmem:[#allocation7 + $0x28] sm:$0xf0] }
 0x15b   :  { %v1150_v35 = vadd.f32 %v1149_v30, %v1136_v26  ;;  %v3483_v26 = vld [vmem:[#allocation7 + $0x54] sm:$0xf0]  ;;  %v3103_v30 = vor.u32 %v3482_v27, %v3100_v29  ;;  %v3156_v20 = vld [vmem:[#allocation7 + $0xc8] sm:$0xf0]  ;;  %v3138_v27 = vld [vmem:[#allocation7 + $0xa0] sm:$0xf] }
 0x15c   :  { %1738 = vmatpush.bf16.msrb.mxu3 %v3039_v32  ;;  %v3099_v28 = vor.u32 %v3483_v26, %v3098_v25  ;;  %v3481_v32 = vld [vmem:[#allocation7 + $0x44] sm:$0xf0]  ;;  %v3148_v25 = vld [vmem:[#allocation7 + $0xb8] sm:$0xf0]  ;;  %v3492_v29 = vld [vmem:[#allocation7 + $0xa4] sm:$0xf] }
 0x15e   :  { %v1121_v1 = vpop.f32.mrf.mxu3 }
 0x15f   :  { %v1122_v57 = vadd.f32 %v1121_v1, %v1108_v61 }
 0x160   :  { %v1163_v31 = vpop.f32.mrf.mxu2  ;;  %1739 = vmatpush.bf16.msrb.mxu3 %v3031_v41  ;;  %v3083_v41 = vor.u32 %v3479_v39, %v3082_v38  ;;  %v3490_v38 = vld [vmem:[#allocation7 + $0x94] sm:$0xf] }
 0x161   :  { %v1241_v9 = vmax.f32 %v1122_v57, 0.0  ;;  %v1164_v36 = vadd.f32 %v1163_v31, %v1150_v35  ;;  %v3090_v31 = vld [vmem:[#allocation7 + $0x40] sm:$0xf] }
 0x162   :  { %v3091_v35 = vor.u32 %v3481_v32, %v3090_v31  ;;  %v3140_v32 = vld [vmem:[#allocation7 + $0xa8] sm:$0xf0] }
 0x163   :  { %v1245_v16 = vpack.c.bf16 %v1241_v9, %v1237_v8 }
 0x164   :  { %1740 = vmatpush.bf16.msrb.mxu3 %v3023_v47  ;;  %v3502_v47 = vld [vmem:[#allocation7 + $0xf4] sm:$0xf] }
 0x165   :  { %1660 = vmatmul.bf16.vlgmr.msrb.gmra.mxu1 %v1245_v16  ;;  %1702 = vmatmul.bf16.vlgmr.msrb.gmra.mxu0 %v1244_v33 }
 0x166   :  { %v1175_v24 = vpop.f32.mrf.mxu3 }
 0x167   :  { %v1176_v33 = vadd.f32 %v1175_v24, %v1162_v18  ;;  %v3111_v24 = vor.u32 %v3484_v21, %v3108_v13  ;;  %v3480_v18 = vld [vmem:[#allocation7 + $0x44] sm:$0xf]  ;;  %v3146_v21 = vld [vmem:[#allocation7 + $0xb0] sm:$0xf]  ;;  %v3494_v13 = vld [vmem:[#allocation7 + $0xb4] sm:$0xf] }
 0x168   :  { %1741 = vmatpush.bf16.msrb.mxu3 %v3015_v51  ;;  %v3477_v51 = vld [vmem:[#allocation7 + $0x24] sm:$0xf0]  ;;  %v3151_v26 = vor.u32 %v3494_v13, %v3148_v25  ;;  %v3510_v13 = vld [vmem:[#allocation8 + $0x30] sm:$0xff] }
 0x169   :  { %v1238_v43 = vmax.f32 %v1176_v33, 0.0  ;;  %v3075_v54 = vor.u32 %v3477_v51, %v3074_v50  ;;  %v3509_v25 = vld [vmem:[#allocation8 + $0x28] sm:$0xff] }
 0x16a   :  { %v1203_v60 = vpop.f32.mrf.mxu1 }
 0x16c   :  { %1742 = vmatpush.bf16.msrb.mxu3 %v3007_v56  ;;  %v3476_v56 = vld [vmem:[#allocation7 + $0x24] sm:$0xf] }
 0x16e   :  { %v1177_v40 = vpop.f32.mrf.mxu3 }
 0x16f   :  { %v1178_v42 = vadd.f32 %v1177_v40, %v1164_v36  ;;  %v3092_v36 = vld [vmem:[#allocation7 + $0x48] sm:$0xf0]  ;;  %v3178_v40 = vld [vmem:[#allocation7 + $0xf0] sm:$0xf] }
 0x170   :  { %v1189_v55 = vpop.f32.mrf.mxu0  ;;  %1743 = vmatpush.bf16.msrb.mxu3 %v2999_v34  ;;  %v3095_v33 = vor.u32 %v3480_v18, %v3092_v36  ;;  %v3172_v34 = vld [vmem:[#allocation7 + $0xe8] sm:$0xf0]  ;;  %v3143_v18 = vor.u32 %v3492_v29, %v3140_v32  ;;  %v3130_v36 = vld [vmem:[#allocation7 + $0x90] sm:$0xf]  ;;  %v3507_v29 = vld [vmem:[#allocation8 + $0x18] sm:$0xff] }
 0x171   :  { %v1242_v44 = vmax.f32 %v1178_v42, 0.0  ;;  %v1190_v0 = vadd.f32 %v1189_v55, %v367_v62  ;;  %v3503_v42 = vld [vmem:[#allocation7 + $0xf4] sm:$0xf0]  ;;  %v3501_v55 = vld [vmem:[#allocation7 + $0xe4] sm:$0xf0] }
 0x172   :  { %v1205_v57 = vpop.f32.mrf.mxu1  ;;  %v3179_v45 = vor.u32 %v3503_v42, %v3178_v40  ;;  %v3171_v59 = vor.u32 %v3501_v55, %v3170_v52  ;;  %v3515_v32 = vld [vmem:[#allocation8 + $0x58] sm:$0xff] }
 0x173   :  { %v1246_v48 = vpack.c.bf16 %v1242_v44, %v1238_v43  ;;  %v1204_v2 = vadd.f32 %v1203_v60, %v1190_v0  ;;  %v3478_v43 = vld [vmem:[#allocation7 + $0x34] sm:$0xf]  ;;  %v3084_v44 = vld [vmem:[#allocation7 + $0x38] sm:$0xf0]  ;;  %v3079_v60 = vor.u32 %v3476_v56, %v3076_v58  ;;  %v3475_v0 = vld [vmem:[#allocation7 + $0x14] sm:$0xf0] }
 0x174   :  { %v3087_v46 = vor.u32 %v3478_v43, %v3084_v44  ;;  %1968 = vmatpush.bf16.msrb.mxu1 %v3179_v45  ;;  %v3122_v43 = vld [vmem:[#allocation7 + $0x80] sm:$0xf]  ;;  %v3489_v44 = vld [vmem:[#allocation7 + $0x84] sm:$0xf0]  ;;  %v3488_v45 = vld [vmem:[#allocation7 + $0x84] sm:$0xf] }
 0x175   :  { %1716 = vmatmul.bf16.vlgmr.msra.gmra.mxu1 %v1245_v16  ;;  %1674 = vmatmul.bf16.vlgmr.msrb.gmra.mxu2 %v1246_v48  ;;  %v3115_v16 = vor.u32 %v3487_v14, %v3114_v23  ;;  %v3497_v23 = vld [vmem:[#allocation7 + $0xc4] sm:$0xf0]  ;;  %v3472_v14 = vld [vmem:[#allocation7 + $0x4] sm:$0xf] }
 0x176   :  { %1982 = vmatpush.bf16.msrb.mxu2 %v3119_v19  ;;  %v3063_v17 = vor.u32 %v3472_v14, %v3060_v15  ;;  %v3496_v19 = vld [vmem:[#allocation7 + $0xc4] sm:$0xf] }
 0x177   :  { %1954 = vmatpush.bf16.msra.mxu0 %v3115_v16  ;;  %v3159_v10 = vor.u32 %v3496_v19, %v3156_v20 }
 0x178   :  { %v1217_v61 = vpop.f32.mrf.mxu2  ;;  %v1191_v63 = vpop.f32.mrf.mxu0  ;;  %1969 = vmatpush.bf16.msrb.mxu1 %v3171_v59 }
 0x179   :  { %v1192_v53 = vadd.f32 %v1191_v63, %v367_v62  ;;  %v1218_v4 = vadd.f32 %v1217_v61, %v1204_v2  ;;  %v3500_v61 = vld [vmem:[#allocation7 + $0xe4] sm:$0xf]  ;;  %v3066_v63 = vld [vmem:[#allocation7 + $0x10] sm:$0xf]  ;;  %v3499_v2 = vld [vmem:[#allocation7 + $0xd4] sm:$0xf0] }
 0x17a   :  { %1983 = vmatpush.bf16.msrb.mxu2 %v3111_v24  ;;  %v3175_v62 = vor.u32 %v3500_v61, %v3172_v34 }
 0x17b   :  { %v1206_v5 = vadd.f32 %v1205_v57, %v1192_v53  ;;  %1955 = vmatpush.bf16.msra.mxu0 %v3107_v22  ;;  %v3067_v53 = vor.u32 %v3475_v0, %v3066_v63  ;;  %v3474_v57 = vld [vmem:[#allocation7 + $0x14] sm:$0xf]  ;;  %v3495_v22 = vld [vmem:[#allocation7 + $0xb4] sm:$0xf0] }
 0x17c   :  { %v3147_v24 = vor.u32 %v3495_v22, %v3146_v21  ;;  %v3511_v22 = vld [vmem:[#allocation8 + $0x38] sm:$0xff] }
 0x17e   :  { %1984 = vmatpush.bf16.msrb.mxu2 %v3103_v30 }
 0x17f   :  { %1956 = vmatpush.bf16.msra.mxu0 %v3099_v28  ;;  %v3493_v28 = vld [vmem:[#allocation7 + $0xa4] sm:$0xf0] }
 0x180   :  { %v1219_v3 = vpop.f32.mrf.mxu2  ;;  %v3139_v31 = vor.u32 %v3493_v28, %v3138_v27  ;;  %v3508_v27 = vld [vmem:[#allocation8 + $0x20] sm:$0xff]  ;;  %v3517_v28 = vld [vmem:[#allocation8 + $0x68] sm:$0xff] }
 0x181   :  { %v1220_v6 = vadd.f32 %v1219_v3, %v1206_v5  ;;  %v3068_v3 = vld [vmem:[#allocation7 + $0x18] sm:$0xf0] }
 0x182   :  { %1985 = vmatpush.bf16.msrb.mxu2 %v3095_v33  ;;  %v3071_v5 = vor.u32 %v3474_v57, %v3068_v3  ;;  %v3491_v33 = vld [vmem:[#allocation7 + $0x94] sm:$0xf0] }
 0x183   :  { %1957 = vmatpush.bf16.msra.mxu0 %v3091_v35  ;;  %v3131_v40 = vor.u32 %v3491_v33, %v3130_v36  ;;  %v3504_v36 = vld [vmem:[#allocation8] sm:$0xff]  ;;  %v3513_v33 = vld [vmem:[#allocation8 + $0x48] sm:$0xff] }
 0x185   :  { %1730 = vmatmul.bf16.vlgmr.msra.gmra.mxu2 %v1246_v48  ;;  %v3180_v48 = vld [vmem:[#allocation7 + $0xf8] sm:$0xf0] }
 0x186   :  { %v1231_v1 = vpop.f32.mrf.mxu3  ;;  %v3183_v49 = vor.u32 %v3502_v47, %v3180_v48  ;;  %1986 = vmatpush.bf16.msrb.mxu2 %v3087_v46  ;;  %v1312_v46 = vld [vmem:[%s3898_s6] sm:$0x3]  ;;  %v3123_v47 = vor.u32 %v3489_v44, %v3122_v43  ;;  %v3124_v48 = vld [vmem:[#allocation7 + $0x88] sm:$0xf0] }
 0x187   :  { %v1232_v7 = vadd.f32 %v1231_v1, %v1218_v4  ;;  %1958 = vmatpush.bf16.msra.mxu0 %v3083_v41  ;;  %v3162_v1 = vld [vmem:[#allocation7 + $0xd0] sm:$0xf]  ;;  %v3132_v41 = vld [vmem:[#allocation7 + $0x98] sm:$0xf0]  ;;  %v1314_v51 = vperm.slane %v1312_v46, 0 }
 0x188   :  { %v3163_v4 = vor.u32 %v3499_v2, %v3162_v1  ;;  %v3135_v42 = vor.u32 %v3490_v38, %v3132_v41  ;;  %v3512_v38 = vld [vmem:[#allocation8 + $0x40] sm:$0xff] }
 0x189   :  { %v1239_v9 = vmax.f32 %v1232_v7, 0.0  ;;  %v3164_v7 = vld [vmem:[#allocation7 + $0xd8] sm:$0xf0]  ;;  %v1788_v43 = vld [vmem:[%s3900_s8] sm:$0x3] }
 0x18a   :  { %1987 = vmatpush.bf16.msrb.mxu2 %v3079_v60  ;;  %1970 = vmatpush.bf16.msrb.mxu1 %v3163_v4  ;;  %v1315_v4 = vperm.slane %v1312_v46, 1  ;;  %v1790_v46 = vperm.slane %v1788_v43, 0 }
 0x18b   :  { %1959 = vmatpush.bf16.msra.mxu0 %v3075_v54 }
 0x18e   :  { %v1233_v8 = vpop.f32.mrf.mxu3  ;;  %1988 = vmatpush.bf16.msrb.mxu2 %v3071_v5 }
 0x18f   :  { %v1234_v11 = vadd.f32 %v1233_v8, %v1220_v6  ;;  %v3498_v6 = vld [vmem:[#allocation7 + $0xd4] sm:$0xf]  ;;  %1960 = vmatpush.bf16.msra.mxu0 %v3067_v53 }
 0x190   :  { %v3167_v8 = vor.u32 %v3498_v6, %v3164_v7 }
 0x191   :  { %v1243_v12 = vmax.f32 %v1234_v11, 0.0  ;;  %v3058_v11 = vld [vmem:[#allocation7] sm:$0xf] }
 0x192   :  { %1989 = vmatpush.bf16.msrb.mxu2 %v3063_v17 }
 0x193   :  { %v1247_v37 = vpack.c.bf16 %v1243_v12, %v1239_v9  ;;  %v3473_v9 = vld [vmem:[#allocation7 + $0x4] sm:$0xf0]  ;;  %v3154_v12 = vld [vmem:[#allocation7 + $0xc0] sm:$0xf] }
 0x194   :  { %v3155_v16 = vor.u32 %v3497_v23, %v3154_v12 }
 0x195   :  { %1688 = vmatmul.bf16.vlgmr.msra.gmra.mxu3 %v1247_v37 }
 0x196   :  { %1996 = vmatpush.bf16.msra.mxu3 %v3183_v49  ;;  %1971 = vmatpush.bf16.msrb.mxu1 %v3155_v16  ;;  %v3127_v49 = vor.u32 %v3488_v45, %v3124_v48 }
 0x19a   :  { %1997 = vmatpush.bf16.msra.mxu3 %v3175_v62  ;;  %1972 = vmatpush.bf16.msrb.mxu1 %v3147_v24  ;;  %v3519_v24 = vld [vmem:[#allocation8 + $0x78] sm:$0xff] }
 0x19e   :  { %1998 = vmatpush.bf16.msra.mxu3 %v3167_v8  ;;  %1973 = vmatpush.bf16.msrb.mxu1 %v3139_v31  ;;  %v3506_v31 = vld [vmem:[#allocation8 + $0x10] sm:$0xff] }
 0x1a2   :  { %1999 = vmatpush.bf16.msra.mxu3 %v3159_v10  ;;  %1974 = vmatpush.bf16.msrb.mxu1 %v3131_v40  ;;  %v3526_v40 = vld [vmem:[#allocation10 + $0x30] sm:$0xff] }
 0x1a5   :  { %1744 = vmatmul.bf16.vlgmr.msrb.gmra.mxu3 %v1247_v37  ;;  %v3059_v37 = vor.u32 %v3473_v9, %v3058_v11 }
 0x1a6   :  { %2000 = vmatpush.bf16.msra.mxu3 %v3151_v26  ;;  %1975 = vmatpush.bf16.msrb.mxu1 %v3123_v47  ;;  %v3518_v26 = vld [vmem:[#allocation8 + $0x70] sm:$0xff] }
 0x1a7   :  { %1961 = vmatpush.bf16.msra.mxu0 %v3059_v37 }
 0x1aa   :  { %2001 = vmatpush.bf16.msra.mxu3 %v3143_v18  ;;  %2162 = vmatpush.bf16.msra.mxu1 %v3519_v24  ;;  %v3505_v18 = vld [vmem:[#allocation8 + $0x8] sm:$0xff] }
 0x1ab   :  { %2148 = vmatpush.bf16.msrb.mxu0 %v3511_v22 }
 0x1ae   :  { %2002 = vmatpush.bf16.msra.mxu3 %v3135_v42  ;;  %2163 = vmatpush.bf16.msra.mxu1 %v3518_v26  ;;  %v3525_v42 = vld [vmem:[#allocation10 + $0x28] sm:$0xff] }
 0x1af   :  { %2149 = vmatpush.bf16.msrb.mxu0 %v3510_v13 }
 0x1b2   :  { %2003 = vmatpush.bf16.msra.mxu3 %v3127_v49  ;;  %2164 = vmatpush.bf16.msra.mxu1 %v3517_v28 }
 0x1b3   :  { %2150 = vmatpush.bf16.msrb.mxu0 %v3509_v25 }
 0x1b7   :  { %2151 = vmatpush.bf16.msrb.mxu0 %v3508_v27 }
 0x1bb   :  { %2152 = vmatpush.bf16.msrb.mxu0 %v3507_v29 }
 0x1bf   :  { %2153 = vmatpush.bf16.msrb.mxu0 %v3506_v31 }
 0x1c3   :  { %2154 = vmatpush.bf16.msrb.mxu0 %v3505_v18 }
 0x1c7   :  { %2155 = vmatpush.bf16.msrb.mxu0 %v3504_v36 }
 0x1d2   :  { %v1647_v30 = vpop.f32.mrf.mxu0 }
 0x1d3   :  { %v1648_v56 = vadd.f32 %v1647_v30, %v1314_v51  ;;  %v3516_v30 = vld [vmem:[#allocation8 + $0x60] sm:$0xff] }
 0x1d4   :  { %2165 = vmatpush.bf16.msra.mxu1 %v3516_v30 }
 0x1d8   :  { %2166 = vmatpush.bf16.msra.mxu1 %v3515_v32 }
 0x1da   :  { %v1649_v50 = vpop.f32.mrf.mxu0 }
 0x1db   :  { %v1650_v58 = vadd.f32 %v1649_v50, %v1314_v51  ;;  %v1791_v50 = vperm.slane %v1788_v43, 1 }
 0x1e2   :  { %v1661_v35 = vpop.f32.mrf.mxu1  ;;  %v1703_v34 = vpop.f32.mrf.mxu0 }
 0x1e3   :  { %v1662_v59 = vadd.f32 %v1661_v35, %v1648_v56  ;;  %v1704_v8 = vadd.f32 %v1703_v34, %v1315_v4  ;;  %v3514_v35 = vld [vmem:[#allocation8 + $0x50] sm:$0xff] }
 0x1e4   :  { %2167 = vmatpush.bf16.msra.mxu1 %v3514_v35 }
 0x1e8   :  { %2168 = vmatpush.bf16.msra.mxu1 %v3513_v33 }
 0x1ea   :  { %v1663_v52 = vpop.f32.mrf.mxu1  ;;  %v1705_v6 = vpop.f32.mrf.mxu0 }
 0x1eb   :  { %v1664_v60 = vadd.f32 %v1663_v52, %v1650_v58  ;;  %v1706_v9 = vadd.f32 %v1705_v6, %v1315_v4  ;;  %v3522_v4 = vld [vmem:[#allocation10 + $0x10] sm:$0xff]  ;;  %v3520_v6 = vld [vmem:[#allocation10] sm:$0xff] }
 0x1ec   :  { %2169 = vmatpush.bf16.msra.mxu1 %v3512_v38 }
 0x1f2   :  { %v1717_v0 = vpop.f32.mrf.mxu1 }
 0x1f3   :  { %v1718_v12 = vadd.f32 %v1717_v0, %v1704_v8 }
 0x1f8   :  { %v1675_v39 = vpop.f32.mrf.mxu2 }
 0x1f9   :  { %v1676_v61 = vadd.f32 %v1675_v39, %v1662_v59  ;;  %v3527_v39 = vld [vmem:[#allocation10 + $0x38] sm:$0xff] }
 0x1fa   :  { %v1719_v11 = vpop.f32.mrf.mxu1  ;;  %2247 = vmatpush.bf16.msra.mxu2 %v3527_v39 }
 0x1fb   :  { %v1720_v23 = vadd.f32 %v1719_v11, %v1706_v9  ;;  %v3540_v11 = vld [vmem:[%s3902_s10] ss:$0 sm:$0xff] }
 0x1fe   :  { %2248 = vmatpush.bf16.msra.mxu2 %v3526_v40 }
 0x200   :  { %v1677_v54 = vpop.f32.mrf.mxu2 }
 0x201   :  { %v1678_v62 = vadd.f32 %v1677_v54, %v1664_v60 }
 0x202   :  { %2249 = vmatpush.bf16.msra.mxu2 %v3525_v42 }
 0x208   :  { %v1731_v2 = vpop.f32.mrf.mxu2 }
 0x209   :  { %v1732_v14 = vadd.f32 %v1731_v2, %v1718_v12 }
 0x210   :  { %v1733_v37 = vpop.f32.mrf.mxu2 }
 0x211   :  { %v1734_v15 = vadd.f32 %v1733_v37, %v1720_v23 }
 0x218   :  { %v1689_v55 = vpop.f32.mrf.mxu3 }
 0x219   :  { %v1690_v63 = vadd.f32 %v1689_v55, %v1676_v61 }
 0x21b   :  { %v1750_v57 = vmax.f32 %v1690_v63, 0.0 }
 0x220   :  { %v1691_v1 = vpop.f32.mrf.mxu3 }
 0x221   :  { %v1692_v53 = vadd.f32 %v1691_v1, %v1678_v62 }
 0x223   :  { %v1752_v3 = vmax.f32 %v1692_v53, 0.0 }
 0x225   :  { %v1754_v5 = vpack.c.bf16 %v1752_v3, %v1750_v57  ;;  %v3524_v57 = vld [vmem:[#allocation10 + $0x20] sm:$0xff]  ;;  %v3523_v3 = vld [vmem:[#allocation10 + $0x18] sm:$0xff] }
 0x226   :  { %2250 = vmatpush.bf16.msra.mxu2 %v3524_v57 }
 0x227   :  { %1962 = vmatmul.bf16.vlgmr.msra.gmra.mxu0 %v1754_v5  ;;  %1990 = vmatmul.bf16.vlgmr.msrb.gmra.mxu2 %v1754_v5  ;;  %v3521_v5 = vld [vmem:[#allocation10 + $0x8] sm:$0xff] }
 0x228   :  { %v1745_v7 = vpop.f32.mrf.mxu3 }
 0x229   :  { %v1746_v16 = vadd.f32 %v1745_v7, %v1732_v14 }
 0x22a   :  { %2251 = vmatpush.bf16.msra.mxu2 %v3523_v3 }
 0x22b   :  { %v1751_v20 = vmax.f32 %v1746_v16, 0.0 }
 0x22e   :  { %2252 = vmatpush.bf16.msra.mxu2 %v3522_v4 }
 0x230   :  { %v1747_v17 = vpop.f32.mrf.mxu3 }
 0x231   :  { %v1748_v19 = vadd.f32 %v1747_v17, %v1734_v15 }
 0x232   :  { %2253 = vmatpush.bf16.msra.mxu2 %v3521_v5 }
 0x233   :  { %v1753_v10 = vmax.f32 %v1748_v19, 0.0 }
 0x235   :  { %v1755_v21 = vpack.c.bf16 %v1753_v10, %v1751_v20  ;;  %v3541_v20 = vld [vmem:[%s3904_s12] ss:$0 sm:$0xff] }
 0x236   :  { %2254 = vmatpush.bf16.msra.mxu2 %v3520_v6 }
 0x237   :  { %1976 = vmatmul.bf16.vlgmr.msrb.gmra.mxu1 %v1755_v21  ;;  %2004 = vmatmul.bf16.vlgmr.msra.gmra.mxu3 %v1755_v21 }
 0x2a4   :  { %v1963_v41 = vpop.f32.mrf.mxu0 }
 0x2a5   :  { %v1964_v48 = vadd.f32 %v1963_v41, %v1790_v46 }
 0x2aa   :  { %v1991_v44 = vpop.f32.mrf.mxu2 }
 0x2ab   :  { %v1992_v58 = vadd.f32 %v1991_v44, %v1791_v50 }
 0x2ac   :  { %v1965_v47 = vpop.f32.mrf.mxu0 }
 0x2ad   :  { %v1966_v51 = vadd.f32 %v1965_v47, %v1790_v46 }
 0x2b2   :  { %v1993_v56 = vpop.f32.mrf.mxu2 }
 0x2b3   :  { %v1994_v61 = vadd.f32 %v1993_v56, %v1791_v50 }
 0x2b4   :  { %v1977_v45 = vpop.f32.mrf.mxu1 }
 0x2b5   :  { %v1978_v52 = vadd.f32 %v1977_v45, %v1964_v48 }
 0x2b7   :  { %v2010_v59 = vmax.f32 %v1978_v52, 0.0 }
 0x2ba   :  { %v2005_v49 = vpop.f32.mrf.mxu3 }
 0x2bb   :  { %v2006_v34 = vadd.f32 %v2005_v49, %v1992_v58 }
 0x2bc   :  { %v1979_v54 = vpop.f32.mrf.mxu1 }
 0x2bd   :  { %v1980_v55 = vadd.f32 %v1979_v54, %v1966_v51  ;;  %v2011_v1 = vmax.f32 %v2006_v34, 0.0 }
 0x2bf   :  { %v2012_v60 = vmax.f32 %v1980_v55, 0.0 }
 0x2c1   :  { %v2014_v62 = vpack.c.bf16 %v2012_v60, %v2010_v59 }
 0x2c2   :  { %v2007_v63 = vpop.f32.mrf.mxu3 }
 0x2c3   :  { %v2008_v0 = vadd.f32 %v2007_v63, %v1994_v61  ;;  %2156 = vmatmul.bf16.vlgmr.msrb.gmra.mxu0 %v2014_v62 }
 0x2c5   :  { %v2013_v53 = vmax.f32 %v2008_v0, 0.0 }
 0x2c7   :  { %v2015_v2 = vpack.c.bf16 %v2013_v53, %v2011_v1 }
 0x2c9   :  { %2170 = vmatmul.bf16.vlgmr.msra.gmra.mxu1 %v2015_v2 }
 0x340   :  { %v2157_v7 = vpop.f32.mrf.mxu0 }
 0x341   :  { %v2158_v12 = vadd.f32 %v3540_v11, %v2157_v7 }
 0x346   :  { %v2171_v8 = vpop.f32.mrf.mxu1 }
 0x347   :  { %v2172_v37 = vadd.f32 %v2171_v8, %v2158_v12 }
 0x348   :  { %v2159_v9 = vpop.f32.mrf.mxu0 }
 0x349   :  { %v2160_v23 = vadd.f32 %v3540_v11, %v2159_v9  ;;  %v2176_v16 = vmax.f32 %v2172_v37, 0.0 }
 0x34e   :  { %v2173_v14 = vpop.f32.mrf.mxu1 }
 0x34f   :  { %v2174_v15 = vadd.f32 %v2173_v14, %v2160_v23 }
 0x351   :  { %v2177_v17 = vmax.f32 %v2174_v15, 0.0 }
 0x353   :  { %v2178_v19 = vpack.c.bf16 %v2177_v17, %v2176_v16 }
 0x355   :  { %2255 = vmatmul.bf16.vlgmr.msra.gmra.mxu2 %v2178_v19 }
 0x3d8   :  { %v2256_v10 = vpop.f32.mrf.mxu2 }
 0x3d9   :  { %v2257_v21 = vadd.f32 %v3541_v20, %v2256_v10 }
 0x3db   :  { %2261 = vst [vmem:[#allocation11] sm:$0xff] %v2257_v21 }
 0x3e0   :  { %v2258_v22 = vpop.f32.mrf.mxu2 }
 0x3e1   :  { %v2259_v13 = vadd.f32 %v3541_v20, %v2258_v22 }
 0x3e3   :  { %2262 = vst [vmem:[#allocation11 + $0x8] sm:$0xff] %v2259_v13 }
 0x3e4   :  { %2275 = dma.vmem_to_hbm [thread:$0]  %s2268_s18, 256, %s2270_s19, [#allocation4], %s3695_s16, %s3695_s16, %s3696_s17  }
 0x3e5   :  { %3692 = dma.done.wait [#allocation4], 256  }
 0x3e6   :  { %3693 = vsyncadd [#allocation4], 4294967040 }
 0x3e7   :  { %2280 = vsyncpa [#allocation3], 1 }
 0x3e8   :  { %2281 = vsyncpa [#allocation6], 1 }
 0x3e9   :  { %2282 = vsyncpa [#allocation9], 1 }
 0x3ea   :  { %2283 = vsyncpa [#allocation4], 1 }

</bundles_post_ra>
